<compile_context>
chip_gen: v7x
topology: tpu7x:2x2x1
jax: 0.10.0
libtpu: 0.0.40
codegen_flags: <defaults>
</compile_context>

<pallas_src>
import math
import jax
import jax.numpy as jnp
from jax.experimental import pallas as pl
from jax.experimental.pallas import tpu as pltpu


def make_gru_recurrence_kernel(T, Bp, E, H, L, mxu_dtype):
    """GRU recurrence over all layers; packed gates (r|z|n) along the lane axis."""
    H3 = 3 * H

    def kernel(*refs):
        idx = 0
        x_ref = refs[idx]; idx += 1          # (T*Bp, E)   time-major flat, mxu dtype
        h0_ref = refs[idx]; idx += 1         # (L, Bp, H)  f32
        wx0_ref = refs[idx]; idx += 1        # (E, 3H)     layer-0 token gates
        wc0_ref = refs[idx]; idx += 1        # (H, 3H)     layer-0 context gates
        if L > 1:
            wxl_ref = refs[idx]; idx += 1    # (L-1, H, 3H)
        else:
            wxl_ref = None
        whh_ref = refs[idx]; idx += 1        # (L, H, 3H)
        bih_ref = refs[idx]; idx += 1        # (L, 1, 3H)  f32
        bhh_ref = refs[idx]; idx += 1        # (L, 1, 3H)  f32
        seq_out_ref = refs[idx]; idx += 1    # (T*Bp, H)   mxu dtype (last layer seq)
        hT_ref = refs[idx]; idx += 1         # (L, Bp, H)  f32
        seq_ref = refs[idx]; idx += 1        # scratch (T*Bp, H)  f32
        gi_ref = refs[idx]; idx += 1         # scratch (T*Bp, 3H) f32

        # context = state[-1], constant over time: its gate contribution is
        # computed ONCE (no jnp.tile over T) and added per step in the loop.
        ctx = h0_ref[L - 1]                                       # (Bp, H) f32
        gic = jnp.dot(ctx.astype(mxu_dtype), wc0_ref[...],
                      preferred_element_type=jnp.float32)         # (Bp, 3H) f32

        for l in range(L):                    # static layer loop
            # ---- hoisted input-to-hidden gates: ONE packed matmul per layer ----
            if l == 0:
                gi_ref[...] = (jnp.dot(x_ref[...], wx0_ref[...],
                                       preferred_element_type=jnp.float32)
                               + bih_ref[0])
            else:
                gi_ref[...] = (jnp.dot(seq_ref[...].astype(mxu_dtype),
                                       wxl_ref[l - 1],
                                       preferred_element_type=jnp.float32)
                               + bih_ref[l])

            whh_l = whh_ref[l]                                    # (H, 3H), reused all T steps
            bhh_b = jnp.broadcast_to(bhh_ref[l], (Bp, H3))        # hoisted broadcast

            h = h0_ref[l]                                         # (Bp, H) f32
            for t in range(T):                                    # serial recurrence
                lo = t * Bp
                # single packed hidden matmul per step (critical path: 1 matmul)
                gh = (jnp.dot(h.astype(mxu_dtype), whh_l,
                              preferred_element_type=jnp.float32) + bhh_b)
                gi = gi_ref[lo:lo + Bp, :]
                if l == 0:
                    gi = gi + gic             # context add: free filler under MXU latency
                rz = jax.nn.sigmoid(gi[:, :2 * H] + gh[:, :2 * H])
                r = rz[:, :H]
                z = rz[:, H:]
                n = jnp.tanh(gi[:, 2 * H:] + r * gh[:, 2 * H:])
                h = (1.0 - z) * n + z * h
                seq_ref[lo:lo + Bp, :] = h
            hT_ref[l] = h

        seq_out_ref[...] = seq_ref[...].astype(seq_out_ref.dtype)

    return kernel


def dense_proj_kernel(seq_ref, wd_ref, bd_ref, out_ref):
    """Per-time-tile dense projection: (Bp, H) @ (H, Vp) -> lane-dense (Bp, Vp)."""
    out_ref[...] = (jnp.dot(seq_ref[...], wd_ref[...],
                            preferred_element_type=jnp.float32)
                    + bd_ref[...])


def seq2seq_decoder_forward(X_tokens, state, params):
    """X_tokens: (B, T) int32; state: (L, B, H). Returns (output (B,T,V), new_state)."""
    emb = params["embedding"][X_tokens]                       # (B, T, E) gather (glue)
    B, T = X_tokens.shape
    E = emb.shape[-1]
    L, _, H = state.shape
    V = params["embedding"].shape[0]
    Vp = params["W_dense"].shape[1]
    Bp = ((B + 7) // 8) * 8                                   # pad batch to sublane tile
    mxu_dtype = params["W_hh"].dtype

    x_tm = jnp.transpose(emb, (1, 0, 2)).astype(jnp.float32)  # (T, B, E)
    h0 = state.astype(jnp.float32)
    if Bp != B:
        x_tm = jnp.pad(x_tm, ((0, 0), (0, Bp - B), (0, 0)))
        h0 = jnp.pad(h0, ((0, 0), (0, Bp - B), (0, 0)))
    x_flat = x_tm.reshape(T * Bp, E).astype(mxu_dtype)        # time-major flat

    args = [x_flat, h0, params["W_x0"], params["W_c0"]]
    if L > 1:
        args.append(params["W_xl"])
    args += [params["W_hh"], params["b_ih"], params["b_hh"]]

    vmem = pl.BlockSpec(memory_space=pltpu.MemorySpace.VMEM)
    rec_kernel = make_gru_recurrence_kernel(T, Bp, E, H, L, mxu_dtype)

    # --- kernel 1: serial GRU recurrence (single core, everything in VMEM) ---
    seq_flat, hT = pl.pallas_call(
        rec_kernel,
        out_shape=(jax.ShapeDtypeStruct((T * Bp, H), mxu_dtype),
                   jax.ShapeDtypeStruct((L, Bp, H), jnp.float32)),
        in_specs=[vmem] * len(args),
        out_specs=(vmem, vmem),
        scratch_shapes=[
            pltpu.VMEM((T * Bp, H), jnp.float32),     # per-layer sequence
            pltpu.VMEM((T * Bp, 3 * H), jnp.float32), # packed hoisted input gates
        ],
    )(*args)

    # --- kernel 2: time-tiled, lane-dense dense projection ("parallel" grid
    #     axis -> sharded across the two TensorCores on v7x) ---
    out_flat = pl.pallas_call(
        dense_proj_kernel,
        out_shape=jax.ShapeDtypeStruct((T * Bp, Vp), jnp.float32),
        grid=(T,),
        in_specs=[pl.BlockSpec((Bp, H), lambda t: (t, 0)),
                  pl.BlockSpec((H, Vp), lambda t: (0, 0)),
                  pl.BlockSpec((1, Vp), lambda t: (0, 0))],
        out_specs=pl.BlockSpec((Bp, Vp), lambda t: (t, 0)),
        compiler_params=pltpu.CompilerParams(
            dimension_semantics=("parallel",)),
    )(seq_flat, params["W_dense"], params["b_dense"])

    # Un-pad + permute in JAX glue (keeps kernel stores lane-dense, time-major).
    out = jnp.transpose(out_flat.reshape(T, Bp, Vp), (1, 0, 2))[:B, :, :V]
    return out, hT[:, :B, :]


def reference_forward(X_tokens, state, params):
    """Pure-JAX f32 reference with PyTorch Seq2SeqDecoder semantics."""
    f32 = lambda a: a.astype(jnp.float32)
    emb = f32(params["embedding"][X_tokens])
    x = jnp.transpose(emb, (1, 0, 2))                         # (T, B, E)
    T, B, E = x.shape
    L, _, H = state.shape
    V = params["embedding"].shape[0]

    ctx = f32(state[-1])
    gic = ctx @ f32(params["W_c0"])                           # (B, 3H)
    seq = None
    hs = []
    for l in range(L):
        if l == 0:
            gi_seq = (jnp.einsum("tbe,eg->tbg", x, f32(params["W_x0"]))
                      + params["b_ih"][0] + gic)
        else:
            gi_seq = (jnp.einsum("tbh,hg->tbg", seq, f32(params["W_xl"][l - 1]))
                      + params["b_ih"][l])
        whh = f32(params["W_hh"][l])
        bhh = params["b_hh"][l]
        h = f32(state[l])
        outs = []
        for t in range(T):
            gi = gi_seq[t]
            gh = h @ whh + bhh
            r = jax.nn.sigmoid(gi[:, :H] + gh[:, :H])
            z = jax.nn.sigmoid(gi[:, H:2 * H] + gh[:, H:2 * H])
            n = jnp.tanh(gi[:, 2 * H:] + r * gh[:, 2 * H:])
            h = (1.0 - z) * n + z * h
            outs.append(h)
        hs.append(h)
        seq = jnp.stack(outs, 0)
    logits = (jnp.einsum("tbh,hv->tbv", seq, f32(params["W_dense"])[:, :V])
              + params["b_dense"][:, :V])
    return jnp.transpose(logits, (1, 0, 2)), jnp.stack(hs, 0)


def init_params(key, vocab_size, embed_size, num_hiddens, num_layers,
                mxu_dtype=jnp.bfloat16):
    """Parameters in kernel-friendly packed layout (gate order r|z|n along lanes)."""
    E, H, L, V = embed_size, num_hiddens, num_layers, vocab_size
    Vp = ((V + 127) // 128) * 128
    H3 = 3 * H
    k = 1.0 / math.sqrt(H)
    keys = jax.random.split(key, 4 * L + 3)

    embedding = jax.random.normal(keys[0], (V, E), dtype=jnp.float32)

    w_x0 = w_c0 = None
    w_xl, w_hh, b_ih, b_hh = [], [], [], []
    for l in range(L):
        in_l = E + H if l == 0 else H
        w_i = jax.random.uniform(keys[1 + 4 * l], (in_l, H3),
                                 minval=-k, maxval=k, dtype=jnp.float32)
        if l == 0:
            w_x0 = w_i[:E, :]                    # (E, 3H)
            w_c0 = w_i[E:, :]                    # (H, 3H)
        else:
            w_xl.append(w_i)                     # (H, 3H)
        w_hh.append(jax.random.uniform(keys[2 + 4 * l], (H, H3),
                                       minval=-k, maxval=k, dtype=jnp.float32))
        b_ih.append(jax.random.uniform(keys[3 + 4 * l], (1, H3),
                                       minval=-k, maxval=k, dtype=jnp.float32))
        b_hh.append(jax.random.uniform(keys[4 + 4 * l], (1, H3),
                                       minval=-k, maxval=k, dtype=jnp.float32))

    W_dense_v = jax.random.uniform(keys[-2], (H, V), minval=-k, maxval=k,
                                   dtype=jnp.float32)
    b_dense_v = jax.random.uniform(keys[-1], (1, V), minval=-k, maxval=k,
                                   dtype=jnp.float32)
    # Pad vocab to a lane-dense 128 multiple; padded columns are zero and the
    # wrapper slices them back off.
    W_dense = jnp.zeros((H, Vp), jnp.float32).at[:, :V].set(W_dense_v)
    b_dense = jnp.zeros((1, Vp), jnp.float32).at[:, :V].set(b_dense_v)

    params = {
        "embedding": embedding,                        # (V, E)  f32
        "W_x0": w_x0.astype(mxu_dtype),                # (E, 3H)
        "W_c0": w_c0.astype(mxu_dtype),                # (H, 3H)
        "W_hh": jnp.stack(w_hh, 0).astype(mxu_dtype),  # (L, H, 3H)
        "b_ih": jnp.stack(b_ih, 0),                    # (L, 1, 3H) f32
        "b_hh": jnp.stack(b_hh, 0),                    # (L, 1, 3H) f32
        "W_dense": W_dense.astype(mxu_dtype),          # (H, Vp)
        "b_dense": b_dense,                            # (1, Vp)  f32
    }
    if L > 1:
        params["W_xl"] = jnp.stack(w_xl, 0).astype(mxu_dtype)  # (L-1, H, 3H)
    return params


if __name__ == "__main__":
    vocab_size, embed_size, num_hiddens, num_layers = 40, 32, 32, 2
    batch, num_steps = 4, 7                      # matches X = torch.zeros((4, 7))

    key = jax.random.PRNGKey(0)
    k_par, k_tok, k_state = jax.random.split(key, 3)
    params = init_params(k_par, vocab_size, embed_size, num_hiddens, num_layers,
                         mxu_dtype=jnp.bfloat16)

    X_tokens = jax.random.randint(k_tok, (batch, num_steps), 0, vocab_size,
                                  dtype=jnp.int32)
    # state = decoder.init_state(encoder(X)) == encoder final hidden state (L, B, H)
    state = jax.random.normal(k_state, (num_layers, batch, num_hiddens),
                              dtype=jnp.float32)

    out, new_state = seq2seq_decoder_forward(X_tokens, state, params)
    out = jax.block_until_ready(out)
    new_state = jax.block_until_ready(new_state)

    ref_out, ref_state = reference_forward(X_tokens, state, params)
    assert out.shape == (batch, num_steps, vocab_size)
    assert new_state.shape == (num_layers, batch, num_hiddens)
    # bf16 MXU operands (f32 accumulation / f32 element-wise math): loosened tol.
    assert jnp.allclose(out, ref_out, atol=2e-2, rtol=2e-2)
    assert jnp.allclose(new_state, ref_state, atol=2e-2, rtol=2e-2)

    print("KERNEL_OK")
</pallas_src>

<mosaic_0001>
module attributes {stable_mosaic.version = 11 : i64} {
  func.func @kernel(%arg0: memref<56x32xbf16, #tpu.memory_space<vmem>>, %arg1: memref<2x8x32xf32, #tpu.memory_space<vmem>>, %arg2: memref<32x96xbf16, #tpu.memory_space<vmem>>, %arg3: memref<32x96xbf16, #tpu.memory_space<vmem>>, %arg4: memref<1x32x96xbf16, #tpu.memory_space<vmem>>, %arg5: memref<2x32x96xbf16, #tpu.memory_space<vmem>>, %arg6: memref<2x1x96xf32, #tpu.memory_space<vmem>>, %arg7: memref<2x1x96xf32, #tpu.memory_space<vmem>>, %arg8: memref<56x32xbf16, #tpu.memory_space<vmem>>, %arg9: memref<2x8x32xf32, #tpu.memory_space<vmem>>, %arg10: memref<56x32xf32, #tpu.memory_space<vmem>>, %arg11: memref<56x96xf32, #tpu.memory_space<vmem>>) attributes {dimension_semantics = [], scalar_prefetch = 0 : i64, scratch_operands = 2 : i64, tpu.core_type = #tpu.core_type<tc>} {
    %c1 = arith.constant 1 : index
    %c0 = arith.constant 0 : index
    %c0_0 = arith.constant 0 : index
    %0 = vector.load %arg1[%c1, %c0, %c0_0] : memref<2x8x32xf32, #tpu.memory_space<vmem>>, vector<1x8x32xf32>
    %1 = vector.shape_cast %0 : vector<1x8x32xf32> to vector<8x32xf32>
    %2 = arith.truncf %1 : vector<8x32xf32> to vector<8x32xbf16>
    %c0_1 = arith.constant 0 : index
    %c0_2 = arith.constant 0 : index
    %3 = vector.load %arg3[%c0_1, %c0_2] : memref<32x96xbf16, #tpu.memory_space<vmem>>, vector<32x96xbf16>
    %cst = arith.constant dense<0.000000e+00> : vector<8x96xf32>
    %4 = tpu.matmul %2, %3, %cst {dimension_numbers = #tpu.dot_dimension_numbers<[1], [0], [0], [1], [0, 0, 1, 1], [], []>} : vector<8x32xbf16>, vector<32x96xbf16>, vector<8x96xf32> -> vector<8x96xf32>
    %c0_3 = arith.constant 0 : index
    %c0_4 = arith.constant 0 : index
    %5 = vector.load %arg0[%c0_3, %c0_4] : memref<56x32xbf16, #tpu.memory_space<vmem>>, vector<56x32xbf16>
    %c0_5 = arith.constant 0 : index
    %c0_6 = arith.constant 0 : index
    %6 = vector.load %arg2[%c0_5, %c0_6] : memref<32x96xbf16, #tpu.memory_space<vmem>>, vector<32x96xbf16>
    %cst_7 = arith.constant dense<0.000000e+00> : vector<56x96xf32>
    %7 = tpu.matmul %5, %6, %cst_7 {dimension_numbers = #tpu.dot_dimension_numbers<[1], [0], [0], [1], [0, 0, 1, 1], [], []>} : vector<56x32xbf16>, vector<32x96xbf16>, vector<56x96xf32> -> vector<56x96xf32>
    %c0_8 = arith.constant 0 : index
    %c0_9 = arith.constant 0 : index
    %c0_10 = arith.constant 0 : index
    %8 = vector.load %arg6[%c0_8, %c0_9, %c0_10] : memref<2x1x96xf32, #tpu.memory_space<vmem>>, vector<1x1x96xf32>
    %9 = vector.shape_cast %8 : vector<1x1x96xf32> to vector<1x96xf32>
    %10 = vector.broadcast %9 : vector<1x96xf32> to vector<56x96xf32>
    %11 = arith.addf %7, %10 : vector<56x96xf32>
    %c0_11 = arith.constant 0 : index
    %c0_12 = arith.constant 0 : index
    %12 = vector.load %arg11[%c0_11, %c0_12] : memref<56x96xf32, #tpu.memory_space<vmem>>, vector<56x96xf32>
    tpu.vector_store %arg11[%c0_11, %c0_12], %11 {strides = array<i32>} : memref<56x96xf32, #tpu.memory_space<vmem>>, vector<56x96xf32>,
    %c0_13 = arith.constant 0 : index
    %c0_14 = arith.constant 0 : index
    %c0_15 = arith.constant 0 : index
    %13 = vector.load %arg5[%c0_13, %c0_14, %c0_15] : memref<2x32x96xbf16, #tpu.memory_space<vmem>>, vector<1x32x96xbf16>
    %14 = vector.shape_cast %13 : vector<1x32x96xbf16> to vector<32x96xbf16>
    %c0_16 = arith.constant 0 : index
    %c0_17 = arith.constant 0 : index
    %c0_18 = arith.constant 0 : index
    %15 = vector.load %arg7[%c0_16, %c0_17, %c0_18] : memref<2x1x96xf32, #tpu.memory_space<vmem>>, vector<1x1x96xf32>
    %16 = vector.shape_cast %15 : vector<1x1x96xf32> to vector<1x96xf32>
    %17 = vector.shape_cast %16 : vector<1x96xf32> to vector<1x96xf32>
    %18 = vector.broadcast %17 : vector<1x96xf32> to vector<8x96xf32>
    %c0_19 = arith.constant 0 : index
    %c0_20 = arith.constant 0 : index
    %c0_21 = arith.constant 0 : index
    %19 = vector.load %arg1[%c0_19, %c0_20, %c0_21] : memref<2x8x32xf32, #tpu.memory_space<vmem>>, vector<1x8x32xf32>
    %20 = vector.shape_cast %19 : vector<1x8x32xf32> to vector<8x32xf32>
    %21 = arith.truncf %20 : vector<8x32xf32> to vector<8x32xbf16>
    %cst_22 = arith.constant dense<0.000000e+00> : vector<8x96xf32>
    %22 = tpu.matmul %21, %14, %cst_22 {dimension_numbers = #tpu.dot_dimension_numbers<[1], [0], [0], [1], [0, 0, 1, 1], [], []>} : vector<8x32xbf16>, vector<32x96xbf16>, vector<8x96xf32> -> vector<8x96xf32>
    %23 = arith.addf %22, %18 : vector<8x96xf32>
    %c0_23 = arith.constant 0 : index
    %c0_24 = arith.constant 0 : index
    %24 = vector.load %arg11[%c0_23, %c0_24] : memref<56x96xf32, #tpu.memory_space<vmem>>, vector<8x96xf32>
    %25 = arith.addf %24, %4 : vector<8x96xf32>
    %26 = vector.extract_strided_slice %25 {offsets = [0, 0], sizes = [8, 64], strides = [1, 1]} : vector<8x96xf32> to vector<8x64xf32>
    %27 = vector.extract_strided_slice %23 {offsets = [0, 0], sizes = [8, 64], strides = [1, 1]} : vector<8x96xf32> to vector<8x64xf32>
    %28 = arith.addf %26, %27 : vector<8x64xf32>
    %29 = arith.negf %28 : vector<8x64xf32>
    %30 = math.exp %29 : vector<8x64xf32>
    %cst_25 = arith.constant 1.000000e+00 : f32
    %31 = vector.broadcast %cst_25 : f32 to vector<8x64xf32>
    %32 = arith.addf %31, %30 : vector<8x64xf32>
    %33 = arith.divf %31, %32 : vector<8x64xf32>
    %34 = vector.extract_strided_slice %33 {offsets = [0, 0], sizes = [8, 32], strides = [1, 1]} : vector<8x64xf32> to vector<8x32xf32>
    %35 = vector.extract_strided_slice %33 {offsets = [0, 32], sizes = [8, 32], strides = [1, 1]} : vector<8x64xf32> to vector<8x32xf32>
    %36 = vector.extract_strided_slice %25 {offsets = [0, 64], sizes = [8, 32], strides = [1, 1]} : vector<8x96xf32> to vector<8x32xf32>
    %37 = vector.extract_strided_slice %23 {offsets = [0, 64], sizes = [8, 32], strides = [1, 1]} : vector<8x96xf32> to vector<8x32xf32>
    %38 = arith.mulf %34, %37 : vector<8x32xf32>
    %39 = arith.addf %36, %38 : vector<8x32xf32>
    %40 = math.tanh %39 : vector<8x32xf32>
    %cst_26 = arith.constant 1.000000e+00 : f32
    %41 = vector.broadcast %cst_26 : f32 to vector<8x32xf32>
    %42 = arith.subf %41, %35 : vector<8x32xf32>
    %43 = arith.mulf %42, %40 : vector<8x32xf32>
    %44 = arith.mulf %35, %20 : vector<8x32xf32>
    %45 = arith.addf %43, %44 : vector<8x32xf32>
    %c0_27 = arith.constant 0 : index
    %c0_28 = arith.constant 0 : index
    %46 = vector.load %arg10[%c0_27, %c0_28] : memref<56x32xf32, #tpu.memory_space<vmem>>, vector<8x32xf32>
    tpu.vector_store %arg10[%c0_27, %c0_28], %45 {strides = array<i32>} : memref<56x32xf32, #tpu.memory_space<vmem>>, vector<8x32xf32>,
    %47 = arith.truncf %45 : vector<8x32xf32> to vector<8x32xbf16>
    %cst_29 = arith.constant dense<0.000000e+00> : vector<8x96xf32>
    %48 = tpu.matmul %47, %14, %cst_29 {dimension_numbers = #tpu.dot_dimension_numbers<[1], [0], [0], [1], [0, 0, 1, 1], [], []>} : vector<8x32xbf16>, vector<32x96xbf16>, vector<8x96xf32> -> vector<8x96xf32>
    %49 = arith.addf %48, %18 : vector<8x96xf32>
    %c8 = arith.constant 8 : index
    %c0_30 = arith.constant 0 : index
    %50 = vector.load %arg11[%c8, %c0_30] : memref<56x96xf32, #tpu.memory_space<vmem>>, vector<8x96xf32>
    %51 = arith.addf %50, %4 : vector<8x96xf32>
    %52 = vector.extract_strided_slice %51 {offsets = [0, 0], sizes = [8, 64], strides = [1, 1]} : vector<8x96xf32> to vector<8x64xf32>
    %53 = vector.extract_strided_slice %49 {offsets = [0, 0], sizes = [8, 64], strides = [1, 1]} : vector<8x96xf32> to vector<8x64xf32>
    %54 = arith.addf %52, %53 : vector<8x64xf32>
    %55 = arith.negf %54 : vector<8x64xf32>
    %56 = math.exp %55 : vector<8x64xf32>
    %cst_31 = arith.constant 1.000000e+00 : f32
    %57 = vector.broadcast %cst_31 : f32 to vector<8x64xf32>
    %58 = arith.addf %57, %56 : vector<8x64xf32>
    %59 = arith.divf %57, %58 : vector<8x64xf32>
    %60 = vector.extract_strided_slice %59 {offsets = [0, 0], sizes = [8, 32], strides = [1, 1]} : vector<8x64xf32> to vector<8x32xf32>
    %61 = vector.extract_strided_slice %59 {offsets = [0, 32], sizes = [8, 32], strides = [1, 1]} : vector<8x64xf32> to vector<8x32xf32>
    %62 = vector.extract_strided_slice %51 {offsets = [0, 64], sizes = [8, 32], strides = [1, 1]} : vector<8x96xf32> to vector<8x32xf32>
    %63 = vector.extract_strided_slice %49 {offsets = [0, 64], sizes = [8, 32], strides = [1, 1]} : vector<8x96xf32> to vector<8x32xf32>
    %64 = arith.mulf %60, %63 : vector<8x32xf32>
    %65 = arith.addf %62, %64 : vector<8x32xf32>
    %66 = math.tanh %65 : vector<8x32xf32>
    %cst_32 = arith.constant 1.000000e+00 : f32
    %67 = vector.broadcast %cst_32 : f32 to vector<8x32xf32>
    %68 = arith.subf %67, %61 : vector<8x32xf32>
    %69 = arith.mulf %68, %66 : vector<8x32xf32>
    %70 = arith.mulf %61, %45 : vector<8x32xf32>
    %71 = arith.addf %69, %70 : vector<8x32xf32>
    %c8_33 = arith.constant 8 : index
    %c0_34 = arith.constant 0 : index
    %72 = vector.load %arg10[%c8_33, %c0_34] : memref<56x32xf32, #tpu.memory_space<vmem>>, vector<8x32xf32>
    tpu.vector_store %arg10[%c8_33, %c0_34], %71 {strides = array<i32>} : memref<56x32xf32, #tpu.memory_space<vmem>>, vector<8x32xf32>,
    %73 = arith.truncf %71 : vector<8x32xf32> to vector<8x32xbf16>
    %cst_35 = arith.constant dense<0.000000e+00> : vector<8x96xf32>
    %74 = tpu.matmul %73, %14, %cst_35 {dimension_numbers = #tpu.dot_dimension_numbers<[1], [0], [0], [1], [0, 0, 1, 1], [], []>} : vector<8x32xbf16>, vector<32x96xbf16>, vector<8x96xf32> -> vector<8x96xf32>
    %75 = arith.addf %74, %18 : vector<8x96xf32>
    %c16 = arith.constant 16 : index
    %c0_36 = arith.constant 0 : index
    %76 = vector.load %arg11[%c16, %c0_36] : memref<56x96xf32, #tpu.memory_space<vmem>>, vector<8x96xf32>
    %77 = arith.addf %76, %4 : vector<8x96xf32>
    %78 = vector.extract_strided_slice %77 {offsets = [0, 0], sizes = [8, 64], strides = [1, 1]} : vector<8x96xf32> to vector<8x64xf32>
    %79 = vector.extract_strided_slice %75 {offsets = [0, 0], sizes = [8, 64], strides = [1, 1]} : vector<8x96xf32> to vector<8x64xf32>
    %80 = arith.addf %78, %79 : vector<8x64xf32>
    %81 = arith.negf %80 : vector<8x64xf32>
    %82 = math.exp %81 : vector<8x64xf32>
    %cst_37 = arith.constant 1.000000e+00 : f32
    %83 = vector.broadcast %cst_37 : f32 to vector<8x64xf32>
    %84 = arith.addf %83, %82 : vector<8x64xf32>
    %85 = arith.divf %83, %84 : vector<8x64xf32>
    %86 = vector.extract_strided_slice %85 {offsets = [0, 0], sizes = [8, 32], strides = [1, 1]} : vector<8x64xf32> to vector<8x32xf32>
    %87 = vector.extract_strided_slice %85 {offsets = [0, 32], sizes = [8, 32], strides = [1, 1]} : vector<8x64xf32> to vector<8x32xf32>
    %88 = vector.extract_strided_slice %77 {offsets = [0, 64], sizes = [8, 32], strides = [1, 1]} : vector<8x96xf32> to vector<8x32xf32>
    %89 = vector.extract_strided_slice %75 {offsets = [0, 64], sizes = [8, 32], strides = [1, 1]} : vector<8x96xf32> to vector<8x32xf32>
    %90 = arith.mulf %86, %89 : vector<8x32xf32>
    %91 = arith.addf %88, %90 : vector<8x32xf32>
    %92 = math.tanh %91 : vector<8x32xf32>
    %cst_38 = arith.constant 1.000000e+00 : f32
    %93 = vector.broadcast %cst_38 : f32 to vector<8x32xf32>
    %94 = arith.subf %93, %87 : vector<8x32xf32>
    %95 = arith.mulf %94, %92 : vector<8x32xf32>
    %96 = arith.mulf %87, %71 : vector<8x32xf32>
    %97 = arith.addf %95, %96 : vector<8x32xf32>
    %c16_39 = arith.constant 16 : index
    %c0_40 = arith.constant 0 : index
    %98 = vector.load %arg10[%c16_39, %c0_40] : memref<56x32xf32, #tpu.memory_space<vmem>>, vector<8x32xf32>
    tpu.vector_store %arg10[%c16_39, %c0_40], %97 {strides = array<i32>} : memref<56x32xf32, #tpu.memory_space<vmem>>, vector<8x32xf32>,
    %99 = arith.truncf %97 : vector<8x32xf32> to vector<8x32xbf16>
    %cst_41 = arith.constant dense<0.000000e+00> : vector<8x96xf32>
    %100 = tpu.matmul %99, %14, %cst_41 {dimension_numbers = #tpu.dot_dimension_numbers<[1], [0], [0], [1], [0, 0, 1, 1], [], []>} : vector<8x32xbf16>, vector<32x96xbf16>, vector<8x96xf32> -> vector<8x96xf32>
    %101 = arith.addf %100, %18 : vector<8x96xf32>
    %c24 = arith.constant 24 : index
    %c0_42 = arith.constant 0 : index
    %102 = vector.load %arg11[%c24, %c0_42] : memref<56x96xf32, #tpu.memory_space<vmem>>, vector<8x96xf32>
    %103 = arith.addf %102, %4 : vector<8x96xf32>
    %104 = vector.extract_strided_slice %103 {offsets = [0, 0], sizes = [8, 64], strides = [1, 1]} : vector<8x96xf32> to vector<8x64xf32>
    %105 = vector.extract_strided_slice %101 {offsets = [0, 0], sizes = [8, 64], strides = [1, 1]} : vector<8x96xf32> to vector<8x64xf32>
    %106 = arith.addf %104, %105 : vector<8x64xf32>
    %107 = arith.negf %106 : vector<8x64xf32>
    %108 = math.exp %107 : vector<8x64xf32>
    %cst_43 = arith.constant 1.000000e+00 : f32
    %109 = vector.broadcast %cst_43 : f32 to vector<8x64xf32>
    %110 = arith.addf %109, %108 : vector<8x64xf32>
    %111 = arith.divf %109, %110 : vector<8x64xf32>
    %112 = vector.extract_strided_slice %111 {offsets = [0, 0], sizes = [8, 32], strides = [1, 1]} : vector<8x64xf32> to vector<8x32xf32>
    %113 = vector.extract_strided_slice %111 {offsets = [0, 32], sizes = [8, 32], strides = [1, 1]} : vector<8x64xf32> to vector<8x32xf32>
    %114 = vector.extract_strided_slice %103 {offsets = [0, 64], sizes = [8, 32], strides = [1, 1]} : vector<8x96xf32> to vector<8x32xf32>
    %115 = vector.extract_strided_slice %101 {offsets = [0, 64], sizes = [8, 32], strides = [1, 1]} : vector<8x96xf32> to vector<8x32xf32>
    %116 = arith.mulf %112, %115 : vector<8x32xf32>
    %117 = arith.addf %114, %116 : vector<8x32xf32>
    %118 = math.tanh %117 : vector<8x32xf32>
    %cst_44 = arith.constant 1.000000e+00 : f32
    %119 = vector.broadcast %cst_44 : f32 to vector<8x32xf32>
    %120 = arith.subf %119, %113 : vector<8x32xf32>
    %121 = arith.mulf %120, %118 : vector<8x32xf32>
    %122 = arith.mulf %113, %97 : vector<8x32xf32>
    %123 = arith.addf %121, %122 : vector<8x32xf32>
    %c24_45 = arith.constant 24 : index
    %c0_46 = arith.constant 0 : index
    %124 = vector.load %arg10[%c24_45, %c0_46] : memref<56x32xf32, #tpu.memory_space<vmem>>, vector<8x32xf32>
    tpu.vector_store %arg10[%c24_45, %c0_46], %123 {strides = array<i32>} : memref<56x32xf32, #tpu.memory_space<vmem>>, vector<8x32xf32>,
    %125 = arith.truncf %123 : vector<8x32xf32> to vector<8x32xbf16>
    %cst_47 = arith.constant dense<0.000000e+00> : vector<8x96xf32>
    %126 = tpu.matmul %125, %14, %cst_47 {dimension_numbers = #tpu.dot_dimension_numbers<[1], [0], [0], [1], [0, 0, 1, 1], [], []>} : vector<8x32xbf16>, vector<32x96xbf16>, vector<8x96xf32> -> vector<8x96xf32>
    %127 = arith.addf %126, %18 : vector<8x96xf32>
    %c32 = arith.constant 32 : index
    %c0_48 = arith.constant 0 : index
    %128 = vector.load %arg11[%c32, %c0_48] : memref<56x96xf32, #tpu.memory_space<vmem>>, vector<8x96xf32>
    %129 = arith.addf %128, %4 : vector<8x96xf32>
    %130 = vector.extract_strided_slice %129 {offsets = [0, 0], sizes = [8, 64], strides = [1, 1]} : vector<8x96xf32> to vector<8x64xf32>
    %131 = vector.extract_strided_slice %127 {offsets = [0, 0], sizes = [8, 64], strides = [1, 1]} : vector<8x96xf32> to vector<8x64xf32>
    %132 = arith.addf %130, %131 : vector<8x64xf32>
    %133 = arith.negf %132 : vector<8x64xf32>
    %134 = math.exp %133 : vector<8x64xf32>
    %cst_49 = arith.constant 1.000000e+00 : f32
    %135 = vector.broadcast %cst_49 : f32 to vector<8x64xf32>
    %136 = arith.addf %135, %134 : vector<8x64xf32>
    %137 = arith.divf %135, %136 : vector<8x64xf32>
    %138 = vector.extract_strided_slice %137 {offsets = [0, 0], sizes = [8, 32], strides = [1, 1]} : vector<8x64xf32> to vector<8x32xf32>
    %139 = vector.extract_strided_slice %137 {offsets = [0, 32], sizes = [8, 32], strides = [1, 1]} : vector<8x64xf32> to vector<8x32xf32>
    %140 = vector.extract_strided_slice %129 {offsets = [0, 64], sizes = [8, 32], strides = [1, 1]} : vector<8x96xf32> to vector<8x32xf32>
    %141 = vector.extract_strided_slice %127 {offsets = [0, 64], sizes = [8, 32], strides = [1, 1]} : vector<8x96xf32> to vector<8x32xf32>
    %142 = arith.mulf %138, %141 : vector<8x32xf32>
    %143 = arith.addf %140, %142 : vector<8x32xf32>
    %144 = math.tanh %143 : vector<8x32xf32>
    %cst_50 = arith.constant 1.000000e+00 : f32
    %145 = vector.broadcast %cst_50 : f32 to vector<8x32xf32>
    %146 = arith.subf %145, %139 : vector<8x32xf32>
    %147 = arith.mulf %146, %144 : vector<8x32xf32>
    %148 = arith.mulf %139, %123 : vector<8x32xf32>
    %149 = arith.addf %147, %148 : vector<8x32xf32>
    %c32_51 = arith.constant 32 : index
    %c0_52 = arith.constant 0 : index
    %150 = vector.load %arg10[%c32_51, %c0_52] : memref<56x32xf32, #tpu.memory_space<vmem>>, vector<8x32xf32>
    tpu.vector_store %arg10[%c32_51, %c0_52], %149 {strides = array<i32>} : memref<56x32xf32, #tpu.memory_space<vmem>>, vector<8x32xf32>,
    %151 = arith.truncf %149 : vector<8x32xf32> to vector<8x32xbf16>
    %cst_53 = arith.constant dense<0.000000e+00> : vector<8x96xf32>
    %152 = tpu.matmul %151, %14, %cst_53 {dimension_numbers = #tpu.dot_dimension_numbers<[1], [0], [0], [1], [0, 0, 1, 1], [], []>} : vector<8x32xbf16>, vector<32x96xbf16>, vector<8x96xf32> -> vector<8x96xf32>
    %153 = arith.addf %152, %18 : vector<8x96xf32>
    %c40 = arith.constant 40 : index
    %c0_54 = arith.constant 0 : index
    %154 = vector.load %arg11[%c40, %c0_54] : memref<56x96xf32, #tpu.memory_space<vmem>>, vector<8x96xf32>
    %155 = arith.addf %154, %4 : vector<8x96xf32>
    %156 = vector.extract_strided_slice %155 {offsets = [0, 0], sizes = [8, 64], strides = [1, 1]} : vector<8x96xf32> to vector<8x64xf32>
    %157 = vector.extract_strided_slice %153 {offsets = [0, 0], sizes = [8, 64], strides = [1, 1]} : vector<8x96xf32> to vector<8x64xf32>
    %158 = arith.addf %156, %157 : vector<8x64xf32>
    %159 = arith.negf %158 : vector<8x64xf32>
    %160 = math.exp %159 : vector<8x64xf32>
    %cst_55 = arith.constant 1.000000e+00 : f32
    %161 = vector.broadcast %cst_55 : f32 to vector<8x64xf32>
    %162 = arith.addf %161, %160 : vector<8x64xf32>
    %163 = arith.divf %161, %162 : vector<8x64xf32>
    %164 = vector.extract_strided_slice %163 {offsets = [0, 0], sizes = [8, 32], strides = [1, 1]} : vector<8x64xf32> to vector<8x32xf32>
    %165 = vector.extract_strided_slice %163 {offsets = [0, 32], sizes = [8, 32], strides = [1, 1]} : vector<8x64xf32> to vector<8x32xf32>
    %166 = vector.extract_strided_slice %155 {offsets = [0, 64], sizes = [8, 32], strides = [1, 1]} : vector<8x96xf32> to vector<8x32xf32>
    %167 = vector.extract_strided_slice %153 {offsets = [0, 64], sizes = [8, 32], strides = [1, 1]} : vector<8x96xf32> to vector<8x32xf32>
    %168 = arith.mulf %164, %167 : vector<8x32xf32>
    %169 = arith.addf %166, %168 : vector<8x32xf32>
    %170 = math.tanh %169 : vector<8x32xf32>
    %cst_56 = arith.constant 1.000000e+00 : f32
    %171 = vector.broadcast %cst_56 : f32 to vector<8x32xf32>
    %172 = arith.subf %171, %165 : vector<8x32xf32>
    %173 = arith.mulf %172, %170 : vector<8x32xf32>
    %174 = arith.mulf %165, %149 : vector<8x32xf32>
    %175 = arith.addf %173, %174 : vector<8x32xf32>
    %c40_57 = arith.constant 40 : index
    %c0_58 = arith.constant 0 : index
    %176 = vector.load %arg10[%c40_57, %c0_58] : memref<56x32xf32, #tpu.memory_space<vmem>>, vector<8x32xf32>
    tpu.vector_store %arg10[%c40_57, %c0_58], %175 {strides = array<i32>} : memref<56x32xf32, #tpu.memory_space<vmem>>, vector<8x32xf32>,
    %177 = arith.truncf %175 : vector<8x32xf32> to vector<8x32xbf16>
    %cst_59 = arith.constant dense<0.000000e+00> : vector<8x96xf32>
    %178 = tpu.matmul %177, %14, %cst_59 {dimension_numbers = #tpu.dot_dimension_numbers<[1], [0], [0], [1], [0, 0, 1, 1], [], []>} : vector<8x32xbf16>, vector<32x96xbf16>, vector<8x96xf32> -> vector<8x96xf32>
    %179 = arith.addf %178, %18 : vector<8x96xf32>
    %c48 = arith.constant 48 : index
    %c0_60 = arith.constant 0 : index
    %180 = vector.load %arg11[%c48, %c0_60] : memref<56x96xf32, #tpu.memory_space<vmem>>, vector<8x96xf32>
    %181 = arith.addf %180, %4 : vector<8x96xf32>
    %182 = vector.extract_strided_slice %181 {offsets = [0, 0], sizes = [8, 64], strides = [1, 1]} : vector<8x96xf32> to vector<8x64xf32>
    %183 = vector.extract_strided_slice %179 {offsets = [0, 0], sizes = [8, 64], strides = [1, 1]} : vector<8x96xf32> to vector<8x64xf32>
    %184 = arith.addf %182, %183 : vector<8x64xf32>
    %185 = arith.negf %184 : vector<8x64xf32>
    %186 = math.exp %185 : vector<8x64xf32>
    %cst_61 = arith.constant 1.000000e+00 : f32
    %187 = vector.broadcast %cst_61 : f32 to vector<8x64xf32>
    %188 = arith.addf %187, %186 : vector<8x64xf32>
    %189 = arith.divf %187, %188 : vector<8x64xf32>
    %190 = vector.extract_strided_slice %189 {offsets = [0, 0], sizes = [8, 32], strides = [1, 1]} : vector<8x64xf32> to vector<8x32xf32>
    %191 = vector.extract_strided_slice %189 {offsets = [0, 32], sizes = [8, 32], strides = [1, 1]} : vector<8x64xf32> to vector<8x32xf32>
    %192 = vector.extract_strided_slice %181 {offsets = [0, 64], sizes = [8, 32], strides = [1, 1]} : vector<8x96xf32> to vector<8x32xf32>
    %193 = vector.extract_strided_slice %179 {offsets = [0, 64], sizes = [8, 32], strides = [1, 1]} : vector<8x96xf32> to vector<8x32xf32>
    %194 = arith.mulf %190, %193 : vector<8x32xf32>
    %195 = arith.addf %192, %194 : vector<8x32xf32>
    %196 = math.tanh %195 : vector<8x32xf32>
    %cst_62 = arith.constant 1.000000e+00 : f32
    %197 = vector.broadcast %cst_62 : f32 to vector<8x32xf32>
    %198 = arith.subf %197, %191 : vector<8x32xf32>
    %199 = arith.mulf %198, %196 : vector<8x32xf32>
    %200 = arith.mulf %191, %175 : vector<8x32xf32>
    %201 = arith.addf %199, %200 : vector<8x32xf32>
    %c48_63 = arith.constant 48 : index
    %c0_64 = arith.constant 0 : index
    %202 = vector.load %arg10[%c48_63, %c0_64] : memref<56x32xf32, #tpu.memory_space<vmem>>, vector<8x32xf32>
    tpu.vector_store %arg10[%c48_63, %c0_64], %201 {strides = array<i32>} : memref<56x32xf32, #tpu.memory_space<vmem>>, vector<8x32xf32>,
    %c0_65 = arith.constant 0 : index
    %c0_66 = arith.constant 0 : index
    %c0_67 = arith.constant 0 : index
    %203 = vector.load %arg9[%c0_65, %c0_66, %c0_67] : memref<2x8x32xf32, #tpu.memory_space<vmem>>, vector<1x8x32xf32>
    %204 = vector.shape_cast %203 : vector<1x8x32xf32> to vector<8x32xf32>
    %205 = vector.shape_cast %201 : vector<8x32xf32> to vector<1x8x32xf32>
    tpu.vector_store %arg9[%c0_65, %c0_66, %c0_67], %205 {strides = array<i32>} : memref<2x8x32xf32, #tpu.memory_space<vmem>>, vector<1x8x32xf32>,
    %c0_68 = arith.constant 0 : index
    %c0_69 = arith.constant 0 : index
    %206 = vector.load %arg10[%c0_68, %c0_69] : memref<56x32xf32, #tpu.memory_space<vmem>>, vector<56x32xf32>
    %207 = arith.truncf %206 : vector<56x32xf32> to vector<56x32xbf16>
    %c0_70 = arith.constant 0 : index
    %c0_71 = arith.constant 0 : index
    %c0_72 = arith.constant 0 : index
    %208 = vector.load %arg4[%c0_70, %c0_71, %c0_72] : memref<1x32x96xbf16, #tpu.memory_space<vmem>>, vector<1x32x96xbf16>
    %209 = vector.shape_cast %208 : vector<1x32x96xbf16> to vector<32x96xbf16>
    %cst_73 = arith.constant dense<0.000000e+00> : vector<56x96xf32>
    %210 = tpu.matmul %207, %209, %cst_73 {dimension_numbers = #tpu.dot_dimension_numbers<[1], [0], [0], [1], [0, 0, 1, 1], [], []>} : vector<56x32xbf16>, vector<32x96xbf16>, vector<56x96xf32> -> vector<56x96xf32>
    %c1_74 = arith.constant 1 : index
    %c0_75 = arith.constant 0 : index
    %c0_76 = arith.constant 0 : index
    %211 = vector.load %arg6[%c1_74, %c0_75, %c0_76] : memref<2x1x96xf32, #tpu.memory_space<vmem>>, vector<1x1x96xf32>
    %212 = vector.shape_cast %211 : vector<1x1x96xf32> to vector<1x96xf32>
    %213 = vector.broadcast %212 : vector<1x96xf32> to vector<56x96xf32>
    %214 = arith.addf %210, %213 : vector<56x96xf32>
    %c0_77 = arith.constant 0 : index
    %c0_78 = arith.constant 0 : index
    %215 = vector.load %arg11[%c0_77, %c0_78] : memref<56x96xf32, #tpu.memory_space<vmem>>, vector<56x96xf32>
    tpu.vector_store %arg11[%c0_77, %c0_78], %214 {strides = array<i32>} : memref<56x96xf32, #tpu.memory_space<vmem>>, vector<56x96xf32>,
    %c1_79 = arith.constant 1 : index
    %c0_80 = arith.constant 0 : index
    %c0_81 = arith.constant 0 : index
    %216 = vector.load %arg5[%c1_79, %c0_80, %c0_81] : memref<2x32x96xbf16, #tpu.memory_space<vmem>>, vector<1x32x96xbf16>
    %217 = vector.shape_cast %216 : vector<1x32x96xbf16> to vector<32x96xbf16>
    %c1_82 = arith.constant 1 : index
    %c0_83 = arith.constant 0 : index
    %c0_84 = arith.constant 0 : index
    %218 = vector.load %arg7[%c1_82, %c0_83, %c0_84] : memref<2x1x96xf32, #tpu.memory_space<vmem>>, vector<1x1x96xf32>
    %219 = vector.shape_cast %218 : vector<1x1x96xf32> to vector<1x96xf32>
    %220 = vector.shape_cast %219 : vector<1x96xf32> to vector<1x96xf32>
    %221 = vector.broadcast %220 : vector<1x96xf32> to vector<8x96xf32>
    %c1_85 = arith.constant 1 : index
    %c0_86 = arith.constant 0 : index
    %c0_87 = arith.constant 0 : index
    %222 = vector.load %arg1[%c1_85, %c0_86, %c0_87] : memref<2x8x32xf32, #tpu.memory_space<vmem>>, vector<1x8x32xf32>
    %223 = vector.shape_cast %222 : vector<1x8x32xf32> to vector<8x32xf32>
    %224 = arith.truncf %223 : vector<8x32xf32> to vector<8x32xbf16>
    %cst_88 = arith.constant dense<0.000000e+00> : vector<8x96xf32>
    %225 = tpu.matmul %224, %217, %cst_88 {dimension_numbers = #tpu.dot_dimension_numbers<[1], [0], [0], [1], [0, 0, 1, 1], [], []>} : vector<8x32xbf16>, vector<32x96xbf16>, vector<8x96xf32> -> vector<8x96xf32>
    %226 = arith.addf %225, %221 : vector<8x96xf32>
    %c0_89 = arith.constant 0 : index
    %c0_90 = arith.constant 0 : index
    %227 = vector.load %arg11[%c0_89, %c0_90] : memref<56x96xf32, #tpu.memory_space<vmem>>, vector<8x96xf32>
    %228 = vector.extract_strided_slice %227 {offsets = [0, 0], sizes = [8, 64], strides = [1, 1]} : vector<8x96xf32> to vector<8x64xf32>
    %229 = vector.extract_strided_slice %226 {offsets = [0, 0], sizes = [8, 64], strides = [1, 1]} : vector<8x96xf32> to vector<8x64xf32>
    %230 = arith.addf %228, %229 : vector<8x64xf32>
    %231 = arith.negf %230 : vector<8x64xf32>
    %232 = math.exp %231 : vector<8x64xf32>
    %cst_91 = arith.constant 1.000000e+00 : f32
    %233 = vector.broadcast %cst_91 : f32 to vector<8x64xf32>
    %234 = arith.addf %233, %232 : vector<8x64xf32>
    %235 = arith.divf %233, %234 : vector<8x64xf32>
    %236 = vector.extract_strided_slice %235 {offsets = [0, 0], sizes = [8, 32], strides = [1, 1]} : vector<8x64xf32> to vector<8x32xf32>
    %237 = vector.extract_strided_slice %235 {offsets = [0, 32], sizes = [8, 32], strides = [1, 1]} : vector<8x64xf32> to vector<8x32xf32>
    %238 = vector.extract_strided_slice %227 {offsets = [0, 64], sizes = [8, 32], strides = [1, 1]} : vector<8x96xf32> to vector<8x32xf32>
    %239 = vector.extract_strided_slice %226 {offsets = [0, 64], sizes = [8, 32], strides = [1, 1]} : vector<8x96xf32> to vector<8x32xf32>
    %240 = arith.mulf %236, %239 : vector<8x32xf32>
    %241 = arith.addf %238, %240 : vector<8x32xf32>
    %242 = math.tanh %241 : vector<8x32xf32>
    %cst_92 = arith.constant 1.000000e+00 : f32
    %243 = vector.broadcast %cst_92 : f32 to vector<8x32xf32>
    %244 = arith.subf %243, %237 : vector<8x32xf32>
    %245 = arith.mulf %244, %242 : vector<8x32xf32>
    %246 = arith.mulf %237, %223 : vector<8x32xf32>
    %247 = arith.addf %245, %246 : vector<8x32xf32>
    %c0_93 = arith.constant 0 : index
    %c0_94 = arith.constant 0 : index
    %248 = vector.load %arg10[%c0_93, %c0_94] : memref<56x32xf32, #tpu.memory_space<vmem>>, vector<8x32xf32>
    tpu.vector_store %arg10[%c0_93, %c0_94], %247 {strides = array<i32>} : memref<56x32xf32, #tpu.memory_space<vmem>>, vector<8x32xf32>,
    %249 = arith.truncf %247 : vector<8x32xf32> to vector<8x32xbf16>
    %cst_95 = arith.constant dense<0.000000e+00> : vector<8x96xf32>
    %250 = tpu.matmul %249, %217, %cst_95 {dimension_numbers = #tpu.dot_dimension_numbers<[1], [0], [0], [1], [0, 0, 1, 1], [], []>} : vector<8x32xbf16>, vector<32x96xbf16>, vector<8x96xf32> -> vector<8x96xf32>
    %251 = arith.addf %250, %221 : vector<8x96xf32>
    %c8_96 = arith.constant 8 : index
    %c0_97 = arith.constant 0 : index
    %252 = vector.load %arg11[%c8_96, %c0_97] : memref<56x96xf32, #tpu.memory_space<vmem>>, vector<8x96xf32>
    %253 = vector.extract_strided_slice %252 {offsets = [0, 0], sizes = [8, 64], strides = [1, 1]} : vector<8x96xf32> to vector<8x64xf32>
    %254 = vector.extract_strided_slice %251 {offsets = [0, 0], sizes = [8, 64], strides = [1, 1]} : vector<8x96xf32> to vector<8x64xf32>
    %255 = arith.addf %253, %254 : vector<8x64xf32>
    %256 = arith.negf %255 : vector<8x64xf32>
    %257 = math.exp %256 : vector<8x64xf32>
    %cst_98 = arith.constant 1.000000e+00 : f32
    %258 = vector.broadcast %cst_98 : f32 to vector<8x64xf32>
    %259 = arith.addf %258, %257 : vector<8x64xf32>
    %260 = arith.divf %258, %259 : vector<8x64xf32>
    %261 = vector.extract_strided_slice %260 {offsets = [0, 0], sizes = [8, 32], strides = [1, 1]} : vector<8x64xf32> to vector<8x32xf32>
    %262 = vector.extract_strided_slice %260 {offsets = [0, 32], sizes = [8, 32], strides = [1, 1]} : vector<8x64xf32> to vector<8x32xf32>
    %263 = vector.extract_strided_slice %252 {offsets = [0, 64], sizes = [8, 32], strides = [1, 1]} : vector<8x96xf32> to vector<8x32xf32>
    %264 = vector.extract_strided_slice %251 {offsets = [0, 64], sizes = [8, 32], strides = [1, 1]} : vector<8x96xf32> to vector<8x32xf32>
    %265 = arith.mulf %261, %264 : vector<8x32xf32>
    %266 = arith.addf %263, %265 : vector<8x32xf32>
    %267 = math.tanh %266 : vector<8x32xf32>
    %cst_99 = arith.constant 1.000000e+00 : f32
    %268 = vector.broadcast %cst_99 : f32 to vector<8x32xf32>
    %269 = arith.subf %268, %262 : vector<8x32xf32>
    %270 = arith.mulf %269, %267 : vector<8x32xf32>
    %271 = arith.mulf %262, %247 : vector<8x32xf32>
    %272 = arith.addf %270, %271 : vector<8x32xf32>
    %c8_100 = arith.constant 8 : index
    %c0_101 = arith.constant 0 : index
    %273 = vector.load %arg10[%c8_100, %c0_101] : memref<56x32xf32, #tpu.memory_space<vmem>>, vector<8x32xf32>
    tpu.vector_store %arg10[%c8_100, %c0_101], %272 {strides = array<i32>} : memref<56x32xf32, #tpu.memory_space<vmem>>, vector<8x32xf32>,
    %274 = arith.truncf %272 : vector<8x32xf32> to vector<8x32xbf16>
    %cst_102 = arith.constant dense<0.000000e+00> : vector<8x96xf32>
    %275 = tpu.matmul %274, %217, %cst_102 {dimension_numbers = #tpu.dot_dimension_numbers<[1], [0], [0], [1], [0, 0, 1, 1], [], []>} : vector<8x32xbf16>, vector<32x96xbf16>, vector<8x96xf32> -> vector<8x96xf32>
    %276 = arith.addf %275, %221 : vector<8x96xf32>
    %c16_103 = arith.constant 16 : index
    %c0_104 = arith.constant 0 : index
    %277 = vector.load %arg11[%c16_103, %c0_104] : memref<56x96xf32, #tpu.memory_space<vmem>>, vector<8x96xf32>
    %278 = vector.extract_strided_slice %277 {offsets = [0, 0], sizes = [8, 64], strides = [1, 1]} : vector<8x96xf32> to vector<8x64xf32>
    %279 = vector.extract_strided_slice %276 {offsets = [0, 0], sizes = [8, 64], strides = [1, 1]} : vector<8x96xf32> to vector<8x64xf32>
    %280 = arith.addf %278, %279 : vector<8x64xf32>
    %281 = arith.negf %280 : vector<8x64xf32>
    %282 = math.exp %281 : vector<8x64xf32>
    %cst_105 = arith.constant 1.000000e+00 : f32
    %283 = vector.broadcast %cst_105 : f32 to vector<8x64xf32>
    %284 = arith.addf %283, %282 : vector<8x64xf32>
    %285 = arith.divf %283, %284 : vector<8x64xf32>
    %286 = vector.extract_strided_slice %285 {offsets = [0, 0], sizes = [8, 32], strides = [1, 1]} : vector<8x64xf32> to vector<8x32xf32>
    %287 = vector.extract_strided_slice %285 {offsets = [0, 32], sizes = [8, 32], strides = [1, 1]} : vector<8x64xf32> to vector<8x32xf32>
    %288 = vector.extract_strided_slice %277 {offsets = [0, 64], sizes = [8, 32], strides = [1, 1]} : vector<8x96xf32> to vector<8x32xf32>
    %289 = vector.extract_strided_slice %276 {offsets = [0, 64], sizes = [8, 32], strides = [1, 1]} : vector<8x96xf32> to vector<8x32xf32>
    %290 = arith.mulf %286, %289 : vector<8x32xf32>
    %291 = arith.addf %288, %290 : vector<8x32xf32>
    %292 = math.tanh %291 : vector<8x32xf32>
    %cst_106 = arith.constant 1.000000e+00 : f32
    %293 = vector.broadcast %cst_106 : f32 to vector<8x32xf32>
    %294 = arith.subf %293, %287 : vector<8x32xf32>
    %295 = arith.mulf %294, %292 : vector<8x32xf32>
    %296 = arith.mulf %287, %272 : vector<8x32xf32>
    %297 = arith.addf %295, %296 : vector<8x32xf32>
    %c16_107 = arith.constant 16 : index
    %c0_108 = arith.constant 0 : index
    %298 = vector.load %arg10[%c16_107, %c0_108] : memref<56x32xf32, #tpu.memory_space<vmem>>, vector<8x32xf32>
    tpu.vector_store %arg10[%c16_107, %c0_108], %297 {strides = array<i32>} : memref<56x32xf32, #tpu.memory_space<vmem>>, vector<8x32xf32>,
    %299 = arith.truncf %297 : vector<8x32xf32> to vector<8x32xbf16>
    %cst_109 = arith.constant dense<0.000000e+00> : vector<8x96xf32>
    %300 = tpu.matmul %299, %217, %cst_109 {dimension_numbers = #tpu.dot_dimension_numbers<[1], [0], [0], [1], [0, 0, 1, 1], [], []>} : vector<8x32xbf16>, vector<32x96xbf16>, vector<8x96xf32> -> vector<8x96xf32>
    %301 = arith.addf %300, %221 : vector<8x96xf32>
    %c24_110 = arith.constant 24 : index
    %c0_111 = arith.constant 0 : index
    %302 = vector.load %arg11[%c24_110, %c0_111] : memref<56x96xf32, #tpu.memory_space<vmem>>, vector<8x96xf32>
    %303 = vector.extract_strided_slice %302 {offsets = [0, 0], sizes = [8, 64], strides = [1, 1]} : vector<8x96xf32> to vector<8x64xf32>
    %304 = vector.extract_strided_slice %301 {offsets = [0, 0], sizes = [8, 64], strides = [1, 1]} : vector<8x96xf32> to vector<8x64xf32>
    %305 = arith.addf %303, %304 : vector<8x64xf32>
    %306 = arith.negf %305 : vector<8x64xf32>
    %307 = math.exp %306 : vector<8x64xf32>
    %cst_112 = arith.constant 1.000000e+00 : f32
    %308 = vector.broadcast %cst_112 : f32 to vector<8x64xf32>
    %309 = arith.addf %308, %307 : vector<8x64xf32>
    %310 = arith.divf %308, %309 : vector<8x64xf32>
    %311 = vector.extract_strided_slice %310 {offsets = [0, 0], sizes = [8, 32], strides = [1, 1]} : vector<8x64xf32> to vector<8x32xf32>
    %312 = vector.extract_strided_slice %310 {offsets = [0, 32], sizes = [8, 32], strides = [1, 1]} : vector<8x64xf32> to vector<8x32xf32>
    %313 = vector.extract_strided_slice %302 {offsets = [0, 64], sizes = [8, 32], strides = [1, 1]} : vector<8x96xf32> to vector<8x32xf32>
    %314 = vector.extract_strided_slice %301 {offsets = [0, 64], sizes = [8, 32], strides = [1, 1]} : vector<8x96xf32> to vector<8x32xf32>
    %315 = arith.mulf %311, %314 : vector<8x32xf32>
    %316 = arith.addf %313, %315 : vector<8x32xf32>
    %317 = math.tanh %316 : vector<8x32xf32>
    %cst_113 = arith.constant 1.000000e+00 : f32
    %318 = vector.broadcast %cst_113 : f32 to vector<8x32xf32>
    %319 = arith.subf %318, %312 : vector<8x32xf32>
    %320 = arith.mulf %319, %317 : vector<8x32xf32>
    %321 = arith.mulf %312, %297 : vector<8x32xf32>
    %322 = arith.addf %320, %321 : vector<8x32xf32>
    %c24_114 = arith.constant 24 : index
    %c0_115 = arith.constant 0 : index
    %323 = vector.load %arg10[%c24_114, %c0_115] : memref<56x32xf32, #tpu.memory_space<vmem>>, vector<8x32xf32>
    tpu.vector_store %arg10[%c24_114, %c0_115], %322 {strides = array<i32>} : memref<56x32xf32, #tpu.memory_space<vmem>>, vector<8x32xf32>,
    %324 = arith.truncf %322 : vector<8x32xf32> to vector<8x32xbf16>
    %cst_116 = arith.constant dense<0.000000e+00> : vector<8x96xf32>
    %325 = tpu.matmul %324, %217, %cst_116 {dimension_numbers = #tpu.dot_dimension_numbers<[1], [0], [0], [1], [0, 0, 1, 1], [], []>} : vector<8x32xbf16>, vector<32x96xbf16>, vector<8x96xf32> -> vector<8x96xf32>
    %326 = arith.addf %325, %221 : vector<8x96xf32>
    %c32_117 = arith.constant 32 : index
    %c0_118 = arith.constant 0 : index
    %327 = vector.load %arg11[%c32_117, %c0_118] : memref<56x96xf32, #tpu.memory_space<vmem>>, vector<8x96xf32>
    %328 = vector.extract_strided_slice %327 {offsets = [0, 0], sizes = [8, 64], strides = [1, 1]} : vector<8x96xf32> to vector<8x64xf32>
    %329 = vector.extract_strided_slice %326 {offsets = [0, 0], sizes = [8, 64], strides = [1, 1]} : vector<8x96xf32> to vector<8x64xf32>
    %330 = arith.addf %328, %329 : vector<8x64xf32>
    %331 = arith.negf %330 : vector<8x64xf32>
    %332 = math.exp %331 : vector<8x64xf32>
    %cst_119 = arith.constant 1.000000e+00 : f32
    %333 = vector.broadcast %cst_119 : f32 to vector<8x64xf32>
    %334 = arith.addf %333, %332 : vector<8x64xf32>
    %335 = arith.divf %333, %334 : vector<8x64xf32>
    %336 = vector.extract_strided_slice %335 {offsets = [0, 0], sizes = [8, 32], strides = [1, 1]} : vector<8x64xf32> to vector<8x32xf32>
    %337 = vector.extract_strided_slice %335 {offsets = [0, 32], sizes = [8, 32], strides = [1, 1]} : vector<8x64xf32> to vector<8x32xf32>
    %338 = vector.extract_strided_slice %327 {offsets = [0, 64], sizes = [8, 32], strides = [1, 1]} : vector<8x96xf32> to vector<8x32xf32>
    %339 = vector.extract_strided_slice %326 {offsets = [0, 64], sizes = [8, 32], strides = [1, 1]} : vector<8x96xf32> to vector<8x32xf32>
    %340 = arith.mulf %336, %339 : vector<8x32xf32>
    %341 = arith.addf %338, %340 : vector<8x32xf32>
    %342 = math.tanh %341 : vector<8x32xf32>
    %cst_120 = arith.constant 1.000000e+00 : f32
    %343 = vector.broadcast %cst_120 : f32 to vector<8x32xf32>
    %344 = arith.subf %343, %337 : vector<8x32xf32>
    %345 = arith.mulf %344, %342 : vector<8x32xf32>
    %346 = arith.mulf %337, %322 : vector<8x32xf32>
    %347 = arith.addf %345, %346 : vector<8x32xf32>
    %c32_121 = arith.constant 32 : index
    %c0_122 = arith.constant 0 : index
    %348 = vector.load %arg10[%c32_121, %c0_122] : memref<56x32xf32, #tpu.memory_space<vmem>>, vector<8x32xf32>
    tpu.vector_store %arg10[%c32_121, %c0_122], %347 {strides = array<i32>} : memref<56x32xf32, #tpu.memory_space<vmem>>, vector<8x32xf32>,
    %349 = arith.truncf %347 : vector<8x32xf32> to vector<8x32xbf16>
    %cst_123 = arith.constant dense<0.000000e+00> : vector<8x96xf32>
    %350 = tpu.matmul %349, %217, %cst_123 {dimension_numbers = #tpu.dot_dimension_numbers<[1], [0], [0], [1], [0, 0, 1, 1], [], []>} : vector<8x32xbf16>, vector<32x96xbf16>, vector<8x96xf32> -> vector<8x96xf32>
    %351 = arith.addf %350, %221 : vector<8x96xf32>
    %c40_124 = arith.constant 40 : index
    %c0_125 = arith.constant 0 : index
    %352 = vector.load %arg11[%c40_124, %c0_125] : memref<56x96xf32, #tpu.memory_space<vmem>>, vector<8x96xf32>
    %353 = vector.extract_strided_slice %352 {offsets = [0, 0], sizes = [8, 64], strides = [1, 1]} : vector<8x96xf32> to vector<8x64xf32>
    %354 = vector.extract_strided_slice %351 {offsets = [0, 0], sizes = [8, 64], strides = [1, 1]} : vector<8x96xf32> to vector<8x64xf32>
    %355 = arith.addf %353, %354 : vector<8x64xf32>
    %356 = arith.negf %355 : vector<8x64xf32>
    %357 = math.exp %356 : vector<8x64xf32>
    %cst_126 = arith.constant 1.000000e+00 : f32
    %358 = vector.broadcast %cst_126 : f32 to vector<8x64xf32>
    %359 = arith.addf %358, %357 : vector<8x64xf32>
    %360 = arith.divf %358, %359 : vector<8x64xf32>
    %361 = vector.extract_strided_slice %360 {offsets = [0, 0], sizes = [8, 32], strides = [1, 1]} : vector<8x64xf32> to vector<8x32xf32>
    %362 = vector.extract_strided_slice %360 {offsets = [0, 32], sizes = [8, 32], strides = [1, 1]} : vector<8x64xf32> to vector<8x32xf32>
    %363 = vector.extract_strided_slice %352 {offsets = [0, 64], sizes = [8, 32], strides = [1, 1]} : vector<8x96xf32> to vector<8x32xf32>
    %364 = vector.extract_strided_slice %351 {offsets = [0, 64], sizes = [8, 32], strides = [1, 1]} : vector<8x96xf32> to vector<8x32xf32>
    %365 = arith.mulf %361, %364 : vector<8x32xf32>
    %366 = arith.addf %363, %365 : vector<8x32xf32>
    %367 = math.tanh %366 : vector<8x32xf32>
    %cst_127 = arith.constant 1.000000e+00 : f32
    %368 = vector.broadcast %cst_127 : f32 to vector<8x32xf32>
    %369 = arith.subf %368, %362 : vector<8x32xf32>
    %370 = arith.mulf %369, %367 : vector<8x32xf32>
    %371 = arith.mulf %362, %347 : vector<8x32xf32>
    %372 = arith.addf %370, %371 : vector<8x32xf32>
    %c40_128 = arith.constant 40 : index
    %c0_129 = arith.constant 0 : index
    %373 = vector.load %arg10[%c40_128, %c0_129] : memref<56x32xf32, #tpu.memory_space<vmem>>, vector<8x32xf32>
    tpu.vector_store %arg10[%c40_128, %c0_129], %372 {strides = array<i32>} : memref<56x32xf32, #tpu.memory_space<vmem>>, vector<8x32xf32>,
    %374 = arith.truncf %372 : vector<8x32xf32> to vector<8x32xbf16>
    %cst_130 = arith.constant dense<0.000000e+00> : vector<8x96xf32>
    %375 = tpu.matmul %374, %217, %cst_130 {dimension_numbers = #tpu.dot_dimension_numbers<[1], [0], [0], [1], [0, 0, 1, 1], [], []>} : vector<8x32xbf16>, vector<32x96xbf16>, vector<8x96xf32> -> vector<8x96xf32>
    %376 = arith.addf %375, %221 : vector<8x96xf32>
    %c48_131 = arith.constant 48 : index
    %c0_132 = arith.constant 0 : index
    %377 = vector.load %arg11[%c48_131, %c0_132] : memref<56x96xf32, #tpu.memory_space<vmem>>, vector<8x96xf32>
    %378 = vector.extract_strided_slice %377 {offsets = [0, 0], sizes = [8, 64], strides = [1, 1]} : vector<8x96xf32> to vector<8x64xf32>
    %379 = vector.extract_strided_slice %376 {offsets = [0, 0], sizes = [8, 64], strides = [1, 1]} : vector<8x96xf32> to vector<8x64xf32>
    %380 = arith.addf %378, %379 : vector<8x64xf32>
    %381 = arith.negf %380 : vector<8x64xf32>
    %382 = math.exp %381 : vector<8x64xf32>
    %cst_133 = arith.constant 1.000000e+00 : f32
    %383 = vector.broadcast %cst_133 : f32 to vector<8x64xf32>
    %384 = arith.addf %383, %382 : vector<8x64xf32>
    %385 = arith.divf %383, %384 : vector<8x64xf32>
    %386 = vector.extract_strided_slice %385 {offsets = [0, 0], sizes = [8, 32], strides = [1, 1]} : vector<8x64xf32> to vector<8x32xf32>
    %387 = vector.extract_strided_slice %385 {offsets = [0, 32], sizes = [8, 32], strides = [1, 1]} : vector<8x64xf32> to vector<8x32xf32>
    %388 = vector.extract_strided_slice %377 {offsets = [0, 64], sizes = [8, 32], strides = [1, 1]} : vector<8x96xf32> to vector<8x32xf32>
    %389 = vector.extract_strided_slice %376 {offsets = [0, 64], sizes = [8, 32], strides = [1, 1]} : vector<8x96xf32> to vector<8x32xf32>
    %390 = arith.mulf %386, %389 : vector<8x32xf32>
    %391 = arith.addf %388, %390 : vector<8x32xf32>
    %392 = math.tanh %391 : vector<8x32xf32>
    %cst_134 = arith.constant 1.000000e+00 : f32
    %393 = vector.broadcast %cst_134 : f32 to vector<8x32xf32>
    %394 = arith.subf %393, %387 : vector<8x32xf32>
    %395 = arith.mulf %394, %392 : vector<8x32xf32>
    %396 = arith.mulf %387, %372 : vector<8x32xf32>
    %397 = arith.addf %395, %396 : vector<8x32xf32>
    %c48_135 = arith.constant 48 : index
    %c0_136 = arith.constant 0 : index
    %398 = vector.load %arg10[%c48_135, %c0_136] : memref<56x32xf32, #tpu.memory_space<vmem>>, vector<8x32xf32>
    tpu.vector_store %arg10[%c48_135, %c0_136], %397 {strides = array<i32>} : memref<56x32xf32, #tpu.memory_space<vmem>>, vector<8x32xf32>,
    %c1_137 = arith.constant 1 : index
    %c0_138 = arith.constant 0 : index
    %c0_139 = arith.constant 0 : index
    %399 = vector.load %arg9[%c1_137, %c0_138, %c0_139] : memref<2x8x32xf32, #tpu.memory_space<vmem>>, vector<1x8x32xf32>
    %400 = vector.shape_cast %399 : vector<1x8x32xf32> to vector<8x32xf32>
    %401 = vector.shape_cast %397 : vector<8x32xf32> to vector<1x8x32xf32>
    tpu.vector_store %arg9[%c1_137, %c0_138, %c0_139], %401 {strides = array<i32>} : memref<2x8x32xf32, #tpu.memory_space<vmem>>, vector<1x8x32xf32>,
    %c0_140 = arith.constant 0 : index
    %c0_141 = arith.constant 0 : index
    %402 = vector.load %arg10[%c0_140, %c0_141] : memref<56x32xf32, #tpu.memory_space<vmem>>, vector<56x32xf32>
    %403 = arith.truncf %402 : vector<56x32xf32> to vector<56x32xbf16>
    %c0_142 = arith.constant 0 : index
    %c0_143 = arith.constant 0 : index
    %404 = vector.load %arg8[%c0_142, %c0_143] : memref<56x32xbf16, #tpu.memory_space<vmem>>, vector<56x32xbf16>
    tpu.vector_store %arg8[%c0_142, %c0_143], %403 {strides = array<i32>} : memref<56x32xbf16, #tpu.memory_space<vmem>>, vector<56x32xbf16>,
    return
  }
}

</mosaic_0001>

<bundles_post_ra>
// kernel: tpu_custom_call.1
= control target key start
LH: loop header
LB: loop body
LE: loop exit
PB: predicated region body
PF: predicated region fallthrough
CT: control target
= control target key end

     0   :  { %15 = vsyncpa [#allocation5], 0  ;;  %s2628_s0 = inlined_call_operand.vmem [shape: bf16[56,32], index: 0, kind: input, shape index: {}]   ;;  %s2629_s1 = inlined_call_operand.vmem [shape: f32[2,8,32], index: 1, kind: input, shape index: {}]   ;;  %s2630_s2 = inlined_call_operand.hbm [shape: bf16[32,96], index: 2, kind: input, shape index: {}]   ;;  %s2631_s3 = inlined_call_operand.hbm [shape: bf16[32,96], index: 3, kind: input, shape index: {}]   ;;  %s2632_s4 = inlined_call_operand.hbm [shape: bf16[1,32,96], index: 4, kind: input, shape index: {}]   ;;  %s2633_s5 = inlined_call_operand.vmem [shape: bf16[2,32,96], index: 5, kind: input, shape index: {}]   ;;  %s2634_s6 = inlined_call_operand.vmem [shape: f32[2,1,96], index: 6, kind: input, shape index: {}]   ;;  %s2635_s7 = inlined_call_operand.vmem [shape: f32[2,1,96], index: 7, kind: input, shape index: {}]   ;;  %s2636_s8 = inlined_call_operand.vmem [shape: bf16[56,32], index: 8, kind: output, shape index: {0}]   ;;  %s2637_s9 = inlined_call_operand.hbm [shape: f32[2,8,32], index: 9, kind: output, shape index: {1}]  }
   0x1   :  { %16 = vsyncpa [#allocation8], 0 }
   0x2   :  { %17 = vsyncpa [#allocation6], 0  ;;  %s2103_s30 = smov [#allocation7]   ;;  %s2104_s11 = smov [#allocation4]  }
   0x3   :  { %s39_s10 = sshll.u32 %s2103_s30, 4  ;;  %s27_s12 = sshll.u32 %s2104_s11, 4  ;;  %s40_s10 = int_to_ptr.vmem [resolvable:$true] %s39_s10  ;;  %s2165_s12 = int_to_ptr.vmem [resolvable:$true] %s27_s12 }
   0x4   :  { %s2009_s15 = scalar_lea.hbm %s2631_s3, 256 }
   0x5   :  { %p2010_p0 = scmp.ne.s32.totalorder %s2631_s3, %s2009_s15  ;;  %p2013_p1 = scmp.lt.u32.totalorder %s2009_s15, %s2631_s3 }
   0x7   :  { %p2015_p2 = pnand %p2013_p1, %p2010_p0 }
   0x9   :  { %2018 = shalt.err (!%p2015_p2)
}
   0xa   :  { %s2019_s20 = scalar_lea.vmem %s40_s10, 256  ;;  %p2024_p4 = scmp.lt.s32.totalorder %s40_s10, %s40_s10 }
   0xb   :  { %p2020_p3 = scmp.ne.s32.totalorder %s40_s10, %s2019_s20  ;;  %p2025_p5 = scmp.lt.s32.totalorder %s2019_s20, %s2019_s20 }
   0xd   :  { %p2026_p6 = por %p2025_p5, %p2024_p4 }
   0xf   :  { %p2027_p7 = pnand %p2026_p6, %p2020_p3 }
  0x11   :  { %2030 = shalt.err (!%p2027_p7)
}
  0x12   :  { %s2105_s21 = smov 64   ;;  %s2106_s22 = smov 4  }
  0x13   :  { %45 = dma.hbm_to_vmem [thread:$0]  %s2631_s3, 256, %s40_s10, [#allocation8], %s2105_s21, %s2105_s21, %s2106_s22  }
  0x14   :  { %s2031_s27 = scalar_lea.hbm %s2630_s2, 256 }
  0x15   :  { %p2032_p8 = scmp.ne.s32.totalorder %s2630_s2, %s2031_s27  ;;  %p2035_p9 = scmp.lt.u32.totalorder %s2031_s27, %s2630_s2 }
  0x17   :  { %p2037_p10 = pnand %p2035_p9, %p2032_p8 }
  0x19   :  { %2040 = shalt.err (!%p2037_p10)
}
  0x1a   :  { %s2041_s13 = scalar_lea.vmem %s2165_s12, 256  ;;  %p2046_p12 = scmp.lt.s32.totalorder %s2165_s12, %s2165_s12 }
  0x1b   :  { %p2042_p11 = scmp.ne.s32.totalorder %s2165_s12, %s2041_s13  ;;  %p2047_p13 = scmp.lt.s32.totalorder %s2041_s13, %s2041_s13 }
  0x1d   :  { %p2048_p0 = por %p2047_p13, %p2046_p12 }
  0x1f   :  { %p2049_p1 = pnand %p2048_p0, %p2042_p11 }
  0x21   :  { %2052 = shalt.err (!%p2049_p1)
}
  0x22   :  { %33 = dma.hbm_to_vmem [thread:$0]  %s2630_s2, 256, %s2165_s12, [#allocation5], %s2105_s21, %s2105_s21, %s2106_s22  }
  0x23   :  { %s2107_s14 = smov [#allocation9]   ;;  %s2053_s18 = scalar_lea.hbm %s2632_s4, 256 }
  0x24   :  { %s51_s15 = sshll.u32 %s2107_s14, 4  ;;  %p2054_p2 = scmp.ne.s32.totalorder %s2632_s4, %s2053_s18  ;;  %s52_s15 = int_to_ptr.vmem [resolvable:$true] %s51_s15 }
  0x25   :  { %p2057_p3 = scmp.lt.u32.totalorder %s2053_s18, %s2632_s4 }
  0x27   :  { %p2059_p4 = pnand %p2057_p3, %p2054_p2 }
  0x29   :  { %2062 = shalt.err (!%p2059_p4)
}
  0x2a   :  { %s2063_s25 = scalar_lea.vmem %s52_s15, 256  ;;  %p2068_p6 = scmp.lt.s32.totalorder %s52_s15, %s52_s15 }
  0x2b   :  { %p2064_p5 = scmp.ne.s32.totalorder %s52_s15, %s2063_s25  ;;  %p2069_p7 = scmp.lt.s32.totalorder %s2063_s25, %s2063_s25 }
  0x2d   :  { %p2070_p8 = por %p2069_p7, %p2068_p6 }
  0x2f   :  { %p2071_p9 = pnand %p2070_p8, %p2064_p5 }
  0x31   :  { %2074 = shalt.err (!%p2071_p9)
}
  0x32   :  { %57 = dma.hbm_to_vmem [thread:$0]  %s2632_s4, 256, %s52_s15, [#allocation8], %s2105_s21, %s2105_s21, %s2106_s22  }
  0x33   :  { %2097 = dma.done.wait [#allocation5], 256  }
  0x34   :  { %2098 = vsyncadd [#allocation5], 4294967040 }
  0x35   :  { %2099 = dma.done.wait [#allocation8], 512  }
  0x36   :  { %2100 = vsyncadd [#allocation8], 4294966784  ;;  %v2108_v0 = vmov 0.0   ;;  %vm2109_vm0 = vmmov 0   ;;  %v1911_v1 = vld [vmem:[#allocation7] sm:$0xff]   ;;  %v1912_v2 = vld [vmem:[#allocation4] sm:$0xff]  }
  0x37   :  { %1755 = vmatprep.subr.bf16.mxu0 %v2108_v0  ;;  %1759 = vmatprep.mubr.msk.bf16.mxu0 %vm2109_vm0, %v2108_v0  ;;  %v1913_v3 = vld [vmem:[#allocation7 + $0x8] sm:$0xff]   ;;  %v1914_v4 = vld [vmem:[#allocation4 + $0x8] sm:$0xff]   ;;  %vm93_vm1 = vcmask 261120   ;;  %v1915_v7 = vld [vmem:[%s2628_s0] sm:$0xff]   ;;  %vm261_vm2 = vcmask 785408   ;;  %s2110_s23 = smov 96  }
  0x38   :  { %1756 = vmatpush3.bf16.msra.mxu0 %v1911_v1  ;;  %1763 = vmatprep.subr.bf16.mxu1 %v1912_v2  ;;  %v2224_v5 = vld [vmem:[%s2629_s1 + $0x8] sm:$0xff]  ;;  %v2241_v9 = vld [vmem:[%s2633_s5] sm:$0xff]   ;;  %v1919_v11 = vld [vmem:[%s2628_s0 + $0x10] sm:$0xff]   ;;  %s2111_s24 = smov 32   ;;  %vm1591_vm3 = vcmask 257024   ;;  %s2112_s16 = smov [#allocation10]  }
  0x39   :  { %1757 = vmatprep.subr.bf16.mxu0 %v2108_v0  ;;  %1764 = vmatpush3.bf16.msra.mxu1 %v1912_v2  ;;  %v2228_v6 = vpack.c.bf16 %v2224_v5, %v2224_v5  ;;  %v1916_v8 = vld [vmem:[%s2628_s0 + $0x8] sm:$0xff]   ;;  %v2260_v12 = vld [vmem:[%s2629_s1] sm:$0xff]  ;;  %v1920_v14 = vld [vmem:[%s2628_s0 + $0x18] ss:$0 sps:$4 sm:$0xff]   ;;  %s1606_s17 = sshll.u32 %s2112_s16, 4  ;;  %s1607_s17 = int_to_ptr.vmem [resolvable:$true] %s1606_s17 }
  0x3a   :  { %1765 = vmatprep.subr.bf16.mxu1 %v1914_v4  ;;  %1767 = vmatprep.mubr.msk.bf16.mxu1 %vm93_vm1, %v1915_v7  ;;  %v2248_v10 = vld [vmem:[%s2633_s5 + $0x8] sm:$0xff]   ;;  %v281_v13 = vpack.c.bf16 %v2260_v12, %v2260_v12  ;;  %v1625_v16 = vld [vmem:[%s2634_s6] ss:$0 sm:$0xff]  ;;  %s2075_s18 = scalar_lea.vmem %s1607_s17, 256  ;;  %p2080_p11 = scmp.lt.s32.totalorder %s1607_s17, %s1607_s17 }
  0x3b   :  { %v2296_v28 = vld [vmem:[%s2635_s7] ss:$0 sm:$0xff]  ;;  %p2076_p10 = scmp.ne.s32.totalorder %s1607_s17, %s2075_s18  ;;  %p2081_p12 = scmp.lt.s32.totalorder %s2075_s18, %s2075_s18 }
  0x3c   :  { %1758 = vmatpush3.bf16.msra.mxu0 %v1913_v3 }
  0x3d   :  { %1775 = vmatprep.subr.bf16.mxu0 %v2108_v0  ;;  %1766 = vmatpush3.bf16.msra.mxu1 %v1914_v4  ;;  %p2082_p13 = por %p2081_p12, %p2080_p11 }
  0x3e   :  { %1791 = vmatprep.subr.bf16.mxu1 %v2108_v0 }
  0x3f   :  { %1760 = vmatmul.mubr.msk.bf16.vlgmr.msra.gmra.mrb[0].mxu0 %vm93_vm1, %v2228_v6  ;;  %p2083_p0 = pnand %p2082_p13, %p2076_p10 }
  0x40   :  { %1776 = vmatpush3.bf16.msra.mxu0 %v2241_v9  ;;  %1779 = vmatprep.mubr.msk.bf16.mxu0 %vm2109_vm0, %v2108_v0 }
  0x41   :  { %1768 = vmatmul.mubr.msk.bf16.vlgmr.msra.gmra.mrb[0].mxu1 %vm93_vm1, %v1916_v8  ;;  %1777 = vmatprep.subr.bf16.mxu0 %v2108_v0 }
  0x42   :  { %1771 = vmatprep.mubr.msk.bf16.mxu1 %vm93_vm1, %v1919_v11  ;;  %1792 = vmatpush3.bf16.msra.mxu1 %v2241_v9 }
  0x43   :  { %1793 = vmatprep.subr.bf16.mxu1 %v2108_v0 }
  0x44   :  { %1778 = vmatpush3.bf16.msra.mxu0 %v2248_v10 }
  0x45   :  { %1783 = vmatprep.subr.bf16.mxu0 %v2108_v0 }
  0x46   :  { %1794 = vmatpush3.bf16.msra.mxu1 %v2248_v10 }
  0x47   :  { %1780 = vmatmul.mubr.msk.bf16.vlgmr.msra.gmra.mrb[4].mxu0 %vm93_vm1, %v281_v13  ;;  %1807 = vmatprep.subr.bf16.mxu1 %v2108_v0 }
  0x48   :  { %1784 = vmatpush3.bf16.msra.mxu0 %v2241_v9  ;;  %1787 = vmatprep.mubr.msk.bf16.mxu0 %vm2109_vm0, %v2108_v0 }
  0x49   :  { %1772 = vmatmul.mubr.msk.bf16.gmra.mrb[4].mxu1 %vm93_vm1, %v1920_v14  ;;  %1785 = vmatprep.subr.bf16.mxu0 %v2108_v0 }
  0x4a   :  { %1795 = vmatprep.mubr.msk.bf16.mxu1 %vm2109_vm0, %v2108_v0 }
  0x4c   :  { %1786 = vmatpush3.bf16.msra.mxu0 %v2248_v10 }
  0x4d   :  { %1799 = vmatprep.subr.bf16.mxu0 %v2108_v0 }
 0x112   :  { %v2286_v15 = vpop.f32.mrb[0].mxu0 }
 0x113   :  { %v1761_v17 = vpop.f32.mrb[1].mxu0 }
 0x114   :  { %v1769_v18 = vpop.f32.mrb[0].mxu1  ;;  %v134_v19 = vpop.f32.mrb[2].mxu0 }
 0x115   :  { %v240_v20 = vadd.f32 %v1769_v18, %v1625_v16  ;;  %v231_v21 = vpop.f32.mrb[1].mxu1  ;;  %v1762_v22 = vpop.f32.mrb[3].mxu0 }
 0x116   :  { %v232_v23 = vadd.f32 %v1625_v16, %v231_v21  ;;  %v1770_v24 = vpop.f32.mrb[2].mxu1 }
 0x117   :  { %264 = vst.msk [vmem:[#allocation3 + $0x10] sm:$0xff] %vm261_vm2, %v240_v20  ;;  %v243_v25 = vadd.f32 %v1770_v24, %v1625_v16  ;;  %v234_v26 = vpop.f32.mrb[3].mxu1 }
 0x118   :  { %262 = vst.msk [vmem:[#allocation3] sm:$0xff] %vm261_vm2, %v232_v23  ;;  %v235_v27 = vadd.f32 %v1625_v16, %v234_v26 }
 0x119   :  { %265 = vst.msk [vmem:[#allocation3 + $0x18] sm:$0xff] %vm261_vm2, %v243_v25 }
 0x11a   :  { %263 = vst.msk [vmem:[#allocation3 + $0x8] sm:$0xff] %vm261_vm2, %v235_v27  ;;  %v331_v29 = vpop.f32.mrb[4].mxu0 }
 0x11b   :  { %v332_v30 = vadd.f32 %v2296_v28, %v331_v29  ;;  %v1781_v31 = vpop.f32.mrb[5].mxu0 }
 0x11c   :  { %v1773_v32 = vpop.f32.mrb[4].mxu1  ;;  %v334_v33 = vpop.f32.mrb[6].mxu0 }
 0x11d   :  { %v256_v34 = vadd.f32 %v1773_v32, %v1625_v16  ;;  %v247_v35 = vpop.f32.mrb[5].mxu1  ;;  %347 = vrot.lane.b32.xlu0 %v332_v30, %s2105_s21  ;;  %v1782_v36 = vpop.f32.mrb[7].mxu0 }
 0x11e   :  { %v248_v37 = vadd.f32 %v1625_v16, %v247_v35  ;;  %v1774_v38 = vpop.f32.mrb[6].mxu1  ;;  %v501_v33 = vld [vmem:[#allocation3 + $0x10] sm:$0xff] }
 0x11f   :  { %268 = vst.msk [vmem:[#allocation3 + $0x30] sm:$0xff] %vm261_vm2, %v256_v34  ;;  %v250_v39 = vpop.f32.mrb[7].mxu1  ;;  %v337_v41 = vld [vmem:[#allocation3] sm:$0xff]  ;;  %v502_v34 = vadd.f32 %v501_v33, %v2286_v15 }
 0x120   :  { %266 = vst.msk [vmem:[#allocation3 + $0x20] sm:$0xff] %vm261_vm2, %v248_v37  ;;  %v251_v40 = vadd.f32 %v1625_v16, %v250_v39  ;;  %v338_v42 = vadd.f32 %v337_v41, %v2286_v15 }
 0x121   :  { %v421_v3 = vld [vmem:[#allocation3 + $0x8] sm:$0xff] }
 0x122   :  { %267 = vst.msk [vmem:[#allocation3 + $0x28] sm:$0xff] %vm261_vm2, %v251_v40  ;;  %v339_v43 = vadd.f32 %v338_v42, %v332_v30  ;;  %v422_v4 = vadd.f32 %v421_v3, %v2286_v15 }
 0x124   :  { %v1640_v44 = vmul.f32 -1.442695, %v339_v43 }
 0x126   :  { %1925 = vpow2.f32 %v1640_v44 }
 0x130   :  { %v1926_v45 = vpop.eup %1925 }
 0x131   :  { %v343_v46 = vadd.f32 1.0, %v1926_v45 }
 0x133   :  { %1927 = vrcp.f32 %v343_v46 }
 0x13d   :  { %v1928_v47 = vpop.eup %1927 }
 0x13e   :  { %v357_v54 = vsub.f32 1.0, %v1928_v47 }
 0x18f   :  { %v348_v48 = vpop.permute.xlu0 %347 }
 0x190   :  { %v350_v49 = vmul.f32 %v1928_v47, %v348_v48 }
 0x192   :  { %352 = vrot.lane.b32.xlu0 %v350_v49, %s2105_s21 }
 0x204   :  { %v353_v50 = vpop.permute.xlu0 %352 }
 0x205   :  { %v355_v51 = vadd.f32 %v353_v50, %v338_v42 }
 0x207   :  { %1929 = vtanh.f32 %v355_v51 }
 0x211   :  { %v1930_v52 = vpop.eup %1929 }
 0x212   :  { %359 = vrot.lane.b32.xlu1 %v1930_v52, %s2110_s23 }
 0x216   :  { %364 = vrot.lane.b32.xlu1 %v2260_v12, %s2111_s24 }
 0x284   :  { %v360_v53 = vpop.permute.xlu1 %359 }
 0x285   :  { %v362_v56 = vmul.f32 %v360_v53, %v357_v54 }
 0x288   :  { %v365_v55 = vpop.permute.xlu1 %364 }
 0x289   :  { %v367_v57 = vmul.f32 %v1928_v47, %v365_v55 }
 0x28b   :  { %v2310_v58 = vadd.f32 %v367_v57, %v362_v56  ;;  %v581_v57 = vld [vmem:[#allocation3 + $0x18] sm:$0xff] }
 0x28d   :  { %v374_v59 = vpack.c.bf16 %v2310_v58, %v2310_v58 }
 0x28f   :  { %376 = vrot.lane.b32.xlu0 %v374_v59, %s2110_s23  ;;  %v582_v59 = vadd.f32 %v581_v57, %v2286_v15 }
 0x301   :  { %v377_v60 = vpop.permute.xlu0 %376 }
 0x302   :  { %1788 = vmatmul.mubr.msk.bf16.vlgmr.msra.gmra.mrb[8].mxu0 %vm93_vm1, %v377_v60 }
 0x303   :  { %1800 = vmatpush3.bf16.msra.mxu0 %v2241_v9  ;;  %1803 = vmatprep.mubr.msk.bf16.mxu0 %vm2109_vm0, %v2108_v0 }
 0x304   :  { %1801 = vmatprep.subr.bf16.mxu0 %v2108_v0 }
 0x307   :  { %1802 = vmatpush3.bf16.msra.mxu0 %v2248_v10 }
 0x308   :  { %1815 = vmatprep.subr.bf16.mxu0 %v2108_v0 }
 0x3d5   :  { %v415_v61 = vpop.f32.mrb[8].mxu0 }
 0x3d6   :  { %v416_v62 = vadd.f32 %v2296_v28, %v415_v61  ;;  %v1789_v63 = vpop.f32.mrb[9].mxu0 }
 0x3d7   :  { %v418_v1 = vpop.f32.mrb[10].mxu0 }
 0x3d8   :  { %431 = vrot.lane.b32.xlu1 %v416_v62, %s2105_s21  ;;  %v1790_v2 = vpop.f32.mrb[11].mxu0  ;;  %v423_v7 = vadd.f32 %v422_v4, %v416_v62 }
 0x3da   :  { %v1642_v8 = vmul.f32 -1.442695, %v423_v7 }
 0x3dc   :  { %1931 = vpow2.f32 %v1642_v8 }
 0x3e6   :  { %v1932_v11 = vpop.eup %1931 }
 0x3e7   :  { %v427_v12 = vadd.f32 1.0, %v1932_v11 }
 0x3e9   :  { %1933 = vrcp.f32 %v427_v12 }
 0x3f3   :  { %v1934_v13 = vpop.eup %1933 }
 0x3f4   :  { %v441_v20 = vsub.f32 1.0, %v1934_v13  ;;  %v447_v22 = vmul.f32 %v1934_v13, %v2310_v58 }
 0x44a   :  { %v432_v14 = vpop.permute.xlu1 %431 }
 0x44b   :  { %v434_v16 = vmul.f32 %v1934_v13, %v432_v14 }
 0x44d   :  { %436 = vrot.lane.b32.xlu0 %v434_v16, %s2105_s21 }
 0x4bf   :  { %v437_v17 = vpop.permute.xlu0 %436 }
 0x4c0   :  { %v439_v18 = vadd.f32 %v437_v17, %v422_v4 }
 0x4c2   :  { %1935 = vtanh.f32 %v439_v18 }
 0x4cc   :  { %v1936_v19 = vpop.eup %1935 }
 0x4cd   :  { %443 = vrot.lane.b32.xlu1 %v1936_v19, %s2110_s23 }
 0x53f   :  { %v444_v21 = vpop.permute.xlu1 %443 }
 0x540   :  { %v446_v23 = vmul.f32 %v444_v21, %v441_v20 }
 0x542   :  { %v2328_v24 = vadd.f32 %v447_v22, %v446_v23 }
 0x544   :  { %v454_v25 = vpack.c.bf16 %v2328_v24, %v2328_v24 }
 0x546   :  { %456 = vrot.lane.b32.xlu0 %v454_v25, %s2110_s23  ;;  %v661_v25 = vld [vmem:[#allocation3 + $0x20] sm:$0xff] }
 0x5b8   :  { %v457_v26 = vpop.permute.xlu0 %456 }
 0x5b9   :  { %1796 = vmatmul.mubr.msk.bf16.vlgmr.msra.gmra.mrb[8].mxu1 %vm93_vm1, %v457_v26 }
 0x5ba   :  { %1808 = vmatpush3.bf16.msra.mxu1 %v2241_v9  ;;  %1811 = vmatprep.mubr.msk.bf16.mxu1 %vm2109_vm0, %v2108_v0 }
 0x5bb   :  { %1809 = vmatprep.subr.bf16.mxu1 %v2108_v0 }
 0x5be   :  { %1810 = vmatpush3.bf16.msra.mxu1 %v2248_v10 }
 0x5bf   :  { %1823 = vmatprep.subr.bf16.mxu1 %v2108_v0 }
 0x68c   :  { %v495_v27 = vpop.f32.mrb[8].mxu1 }
 0x68d   :  { %v496_v29 = vadd.f32 %v2296_v28, %v495_v27  ;;  %v1797_v30 = vpop.f32.mrb[9].mxu1 }
 0x68e   :  { %v498_v31 = vpop.f32.mrb[10].mxu1 }
 0x68f   :  { %511 = vrot.lane.b32.xlu1 %v496_v29, %s2105_s21  ;;  %v1798_v32 = vpop.f32.mrb[11].mxu1  ;;  %v503_v35 = vadd.f32 %v502_v34, %v496_v29 }
 0x691   :  { %v1644_v36 = vmul.f32 -1.442695, %v503_v35 }
 0x693   :  { %1937 = vpow2.f32 %v1644_v36 }
 0x69d   :  { %v1938_v37 = vpop.eup %1937 }
 0x69e   :  { %v507_v38 = vadd.f32 1.0, %v1938_v37 }
 0x6a0   :  { %1939 = vrcp.f32 %v507_v38 }
 0x6aa   :  { %v1940_v39 = vpop.eup %1939 }
 0x6ab   :  { %v521_v45 = vsub.f32 1.0, %v1940_v39  ;;  %v527_v47 = vmul.f32 %v1940_v39, %v2328_v24 }
 0x701   :  { %v512_v40 = vpop.permute.xlu1 %511 }
 0x702   :  { %v514_v41 = vmul.f32 %v1940_v39, %v512_v40 }
 0x704   :  { %516 = vrot.lane.b32.xlu0 %v514_v41, %s2105_s21 }
 0x776   :  { %v517_v42 = vpop.permute.xlu0 %516 }
 0x777   :  { %v519_v43 = vadd.f32 %v517_v42, %v502_v34 }
 0x779   :  { %1941 = vtanh.f32 %v519_v43 }
 0x783   :  { %v1942_v44 = vpop.eup %1941 }
 0x784   :  { %523 = vrot.lane.b32.xlu1 %v1942_v44, %s2110_s23 }
 0x7f6   :  { %v524_v46 = vpop.permute.xlu1 %523 }
 0x7f7   :  { %v526_v48 = vmul.f32 %v524_v46, %v521_v45 }
 0x7f9   :  { %v2346_v49 = vadd.f32 %v527_v47, %v526_v48  ;;  %v741_v48 = vld [vmem:[#allocation3 + $0x28] sm:$0xff] }
 0x7fb   :  { %v534_v50 = vpack.c.bf16 %v2346_v49, %v2346_v49 }
 0x7fd   :  { %536 = vrot.lane.b32.xlu0 %v534_v50, %s2110_s23  ;;  %v742_v50 = vadd.f32 %v741_v48, %v2286_v15 }
 0x86f   :  { %v537_v51 = vpop.permute.xlu0 %536 }
 0x870   :  { %1804 = vmatmul.mubr.msk.bf16.vlgmr.msra.gmra.mrb[12].mxu0 %vm93_vm1, %v537_v51 }
 0x871   :  { %1816 = vmatpush3.bf16.msra.mxu0 %v2241_v9  ;;  %1819 = vmatprep.mubr.msk.bf16.mxu0 %vm2109_vm0, %v2108_v0 }
 0x872   :  { %1817 = vmatprep.subr.bf16.mxu0 %v2108_v0 }
 0x875   :  { %1818 = vmatpush3.bf16.msra.mxu0 %v2248_v10 }
 0x943   :  { %v575_v52 = vpop.f32.mrb[12].mxu0 }
 0x944   :  { %v576_v53 = vadd.f32 %v2296_v28, %v575_v52  ;;  %v1805_v54 = vpop.f32.mrb[13].mxu0 }
 0x945   :  { %v578_v55 = vpop.f32.mrb[14].mxu0 }
 0x946   :  { %591 = vrot.lane.b32.xlu1 %v576_v53, %s2105_s21  ;;  %v1806_v56 = vpop.f32.mrb[15].mxu0  ;;  %v583_v60 = vadd.f32 %v582_v59, %v576_v53 }
 0x948   :  { %v1646_v61 = vmul.f32 -1.442695, %v583_v60 }
 0x94a   :  { %1943 = vpow2.f32 %v1646_v61 }
 0x954   :  { %v1944_v62 = vpop.eup %1943 }
 0x955   :  { %v587_v63 = vadd.f32 1.0, %v1944_v62 }
 0x957   :  { %1945 = vrcp.f32 %v587_v63 }
 0x961   :  { %v1946_v1 = vpop.eup %1945 }
 0x962   :  { %v601_v11 = vsub.f32 1.0, %v1946_v1  ;;  %v607_v13 = vmul.f32 %v1946_v1, %v2346_v49 }
 0x9b8   :  { %v592_v2 = vpop.permute.xlu1 %591 }
 0x9b9   :  { %v594_v3 = vmul.f32 %v1946_v1, %v592_v2 }
 0x9bb   :  { %596 = vrot.lane.b32.xlu0 %v594_v3, %s2105_s21  ;;  %v1923_v3 = vld [vmem:[#allocation9] sm:$0xff]  }
 0x9bc   :  { %1831 = vmatprep.subr.bf16.mxu0 %v1923_v3 }
 0xa2d   :  { %v597_v4 = vpop.permute.xlu0 %596 }
 0xa2e   :  { %v599_v7 = vadd.f32 %v597_v4, %v582_v59  ;;  %v1924_v4 = vld [vmem:[#allocation9 + $0x8] sm:$0xff]  }
 0xa30   :  { %1947 = vtanh.f32 %v599_v7 }
 0xa3a   :  { %v1948_v8 = vpop.eup %1947 }
 0xa3b   :  { %603 = vrot.lane.b32.xlu1 %v1948_v8, %s2110_s23 }
 0xaad   :  { %v604_v12 = vpop.permute.xlu1 %603 }
 0xaae   :  { %v606_v14 = vmul.f32 %v604_v12, %v601_v11 }
 0xab0   :  { %v2363_v16 = vadd.f32 %v607_v13, %v606_v14  ;;  %v2419_v13 = vld [vmem:[%s2633_s5 + $0x18] sm:$0xff]  }
 0xab2   :  { %v614_v17 = vpack.c.bf16 %v2363_v16, %v2363_v16 }
 0xab4   :  { %616 = vrot.lane.b32.xlu0 %v614_v17, %s2110_s23 }
 0xb26   :  { %v617_v18 = vpop.permute.xlu0 %616 }
 0xb27   :  { %1812 = vmatmul.mubr.msk.bf16.vlgmr.msra.gmra.mrb[12].mxu1 %vm93_vm1, %v617_v18 }
 0xb28   :  { %1824 = vmatpush3.bf16.msra.mxu1 %v2241_v9  ;;  %1827 = vmatprep.mubr.msk.bf16.mxu1 %vm2109_vm0, %v2108_v0  ;;  %v662_v9 = vadd.f32 %v661_v25, %v2286_v15 }
 0xb29   :  { %1825 = vmatprep.subr.bf16.mxu1 %v2108_v0 }
 0xb2c   :  { %1826 = vmatpush3.bf16.msra.mxu1 %v2248_v10 }
 0xb2d   :  { %1843 = vmatprep.subr.bf16.mxu1 %v2108_v0 }
 0xbfa   :  { %v655_v19 = vpop.f32.mrb[12].mxu1 }
 0xbfb   :  { %v656_v20 = vadd.f32 %v2296_v28, %v655_v19  ;;  %v1813_v21 = vpop.f32.mrb[13].mxu1 }
 0xbfc   :  { %v658_v22 = vpop.f32.mrb[14].mxu1 }
 0xbfd   :  { %671 = vrot.lane.b32.xlu1 %v656_v20, %s2105_s21  ;;  %v1814_v23 = vpop.f32.mrb[15].mxu1  ;;  %v663_v26 = vadd.f32 %v662_v9, %v656_v20 }
 0xbff   :  { %v1648_v27 = vmul.f32 -1.442695, %v663_v26 }
 0xc01   :  { %1949 = vpow2.f32 %v1648_v27 }
 0xc0b   :  { %v1950_v29 = vpop.eup %1949 }
 0xc0c   :  { %v667_v30 = vadd.f32 1.0, %v1950_v29 }
 0xc0e   :  { %1951 = vrcp.f32 %v667_v30 }
 0xc18   :  { %v1952_v10 = vpop.eup %1951 }
 0xc19   :  { %v681_v36 = vsub.f32 1.0, %v1952_v10  ;;  %v687_v38 = vmul.f32 %v1952_v10, %v2363_v16 }
 0xc6f   :  { %v672_v31 = vpop.permute.xlu1 %671 }
 0xc70   :  { %v674_v32 = vmul.f32 %v1952_v10, %v672_v31  ;;  %v2452_v31 = vld [vmem:[%s2634_s6 + $0x1] ss:$0 sm:$0xff] }
 0xc72   :  { %676 = vrot.lane.b32.xlu0 %v674_v32, %s2105_s21 }
 0xce4   :  { %v677_v33 = vpop.permute.xlu0 %676 }
 0xce5   :  { %v679_v34 = vadd.f32 %v677_v33, %v662_v9  ;;  %v2445_v9 = vld [vmem:[%s2635_s7 + $0x1] ss:$0 sm:$0xff] }
 0xce7   :  { %1953 = vtanh.f32 %v679_v34 }
 0xcf1   :  { %v1954_v35 = vpop.eup %1953 }
 0xcf2   :  { %683 = vrot.lane.b32.xlu1 %v1954_v35, %s2110_s23 }
 0xd64   :  { %v684_v37 = vpop.permute.xlu1 %683 }
 0xd65   :  { %v686_v39 = vmul.f32 %v684_v37, %v681_v36 }
 0xd67   :  { %v2381_v40 = vadd.f32 %v687_v38, %v686_v39 }
 0xd69   :  { %v694_v41 = vpack.c.bf16 %v2381_v40, %v2381_v40 }
 0xd6b   :  { %696 = vrot.lane.b32.xlu0 %v694_v41, %s2110_s23 }
 0xddd   :  { %v697_v42 = vpop.permute.xlu0 %696 }
 0xdde   :  { %1820 = vmatmul.mubr.msk.bf16.vlgmr.msra.gmra.mrb[16].mxu0 %vm93_vm1, %v697_v42 }
 0xddf   :  { %1832 = vmatpush3.bf16.msra.mxu0 %v1923_v3 }
 0xde0   :  { %1833 = vmatprep.subr.bf16.mxu0 %v1924_v4 }
 0xde3   :  { %1834 = vmatpush3.bf16.msra.mxu0 %v1924_v4 }
 0xde4   :  { %1859 = vmatprep.subr.bf16.mxu0 %v2108_v0 }
 0xeb1   :  { %v735_v43 = vpop.f32.mrb[16].mxu0 }
 0xeb2   :  { %v736_v44 = vadd.f32 %v2296_v28, %v735_v43  ;;  %v1821_v45 = vpop.f32.mrb[17].mxu0 }
 0xeb3   :  { %v738_v46 = vpop.f32.mrb[18].mxu0 }
 0xeb4   :  { %751 = vrot.lane.b32.xlu1 %v736_v44, %s2105_s21  ;;  %v1822_v47 = vpop.f32.mrb[19].mxu0  ;;  %v743_v51 = vadd.f32 %v742_v50, %v736_v44 }
 0xeb6   :  { %v1650_v52 = vmul.f32 -1.442695, %v743_v51  ;;  %v821_v51 = vld [vmem:[#allocation3 + $0x30] sm:$0xff] }
 0xeb8   :  { %1955 = vpow2.f32 %v1650_v52  ;;  %v822_v52 = vadd.f32 %v821_v51, %v2286_v15 }
 0xec2   :  { %v1956_v53 = vpop.eup %1955 }
 0xec3   :  { %v747_v54 = vadd.f32 1.0, %v1956_v53 }
 0xec5   :  { %1957 = vrcp.f32 %v747_v54 }
 0xecf   :  { %v1958_v55 = vpop.eup %1957 }
 0xed0   :  { %v761_v62 = vsub.f32 1.0, %v1958_v55  ;;  %v767_v1 = vmul.f32 %v1958_v55, %v2381_v40 }
 0xf26   :  { %v752_v56 = vpop.permute.xlu1 %751 }
 0xf27   :  { %v754_v57 = vmul.f32 %v1958_v55, %v752_v56 }
 0xf29   :  { %756 = vrot.lane.b32.xlu0 %v754_v57, %s2105_s21 }
 0xf9b   :  { %v757_v59 = vpop.permute.xlu0 %756 }
 0xf9c   :  { %v759_v60 = vadd.f32 %v757_v59, %v742_v50 }
 0xf9e   :  { %1959 = vtanh.f32 %v759_v60 }
 0xfa8   :  { %v1960_v61 = vpop.eup %1959 }
 0xfa9   :  { %763 = vrot.lane.b32.xlu1 %v1960_v61, %s2110_s23 }
 0xfad   :  { %370 = vrot.lane.b32.xlu1 %v2310_v58, %s2110_s23 }
 0xfb1   :  { %530 = vrot.lane.b32.xlu1 %v2346_v49, %s2110_s23  ;;  %v2412_v49 = vld [vmem:[%s2633_s5 + $0x10] sm:$0xff]  }
0x101b   :  { %v764_v63 = vpop.permute.xlu1 %763 }
0x101c   :  { %v766_v2 = vmul.f32 %v764_v63, %v761_v62 }
0x101e   :  { %v2397_v7 = vadd.f32 %v767_v1, %v766_v2 }
0x101f   :  { %v371_v8 = vpop.permute.xlu1 %370 }
0x1020   :  { %373 = vst.msk [vmem:[#allocation2] sm:$0xff] %vm93_vm1, %v371_v8  ;;  %v774_v11 = vpack.c.bf16 %v2397_v7, %v2397_v7 }
0x1022   :  { %776 = vrot.lane.b32.xlu0 %v774_v11, %s2110_s23 }
0x1023   :  { %v531_v58 = vpop.permute.xlu1 %530 }
0x1024   :  { %533 = vst.msk [vmem:[#allocation2 + $0x10] sm:$0xff] %vm93_vm1, %v531_v58 }
0x1026   :  { %450 = vrot.lane.b32.xlu0 %v2328_v24, %s2110_s23 }
0x102a   :  { %610 = vrot.lane.b32.xlu0 %v2363_v16, %s2110_s23  ;;  %v855_v16 = vld [vmem:[#allocation2] sm:$0xff] }
0x102b   :  { %v857_v19 = vld [vmem:[#allocation2 + $0x10] sm:$0xff] }
0x1094   :  { %v777_v12 = vpop.permute.xlu0 %776 }
0x1095   :  { %1828 = vmatmul.mubr.msk.bf16.vlgmr.msra.gmra.mrb[16].mxu1 %vm93_vm1, %v777_v12 }
0x1096   :  { %1844 = vmatpush3.bf16.msra.mxu1 %v2412_v49  ;;  %1847 = vmatprep.mubr.msk.bf16.mxu1 %vm2109_vm0, %v2108_v0 }
0x1097   :  { %1845 = vmatprep.subr.bf16.mxu1 %v2108_v0 }
0x1098   :  { %v451_v24 = vpop.permute.xlu0 %450 }
0x1099   :  { %453 = vst.msk [vmem:[#allocation2 + $0x8] sm:$0xff] %vm93_vm1, %v451_v24 }
0x109a   :  { %1846 = vmatpush3.bf16.msra.mxu1 %v2419_v13 }
0x109b   :  { %1851 = vmatprep.subr.bf16.mxu1 %v2108_v0 }
0x109c   :  { %v611_v14 = vpop.permute.xlu0 %610 }
0x109d   :  { %613 = vst.msk [vmem:[#allocation2 + $0x18] sm:$0xff] %vm93_vm1, %v611_v14  ;;  %1848 = vmatmul.mubr.msk.bf16.vlgmr.msra.gmra.mrb[20].mxu1 %vm93_vm1, %v2228_v6 }
0x109e   :  { %1852 = vmatpush3.bf16.msra.mxu1 %v2412_v49  ;;  %1855 = vmatprep.mubr.msk.bf16.mxu1 %vm2109_vm0, %v2108_v0 }
0x109f   :  { %1853 = vmatprep.subr.bf16.mxu1 %v2108_v0 }
0x10a0   :  { %v856_v17 = vld [vmem:[#allocation2 + $0x8] sm:$0xff] }
0x10a1   :  { %v862_v18 = vpack.c.bf16 %v856_v17, %v855_v16 }
0x10a2   :  { %1854 = vmatpush3.bf16.msra.mxu1 %v2419_v13 }
0x10a3   :  { %1835 = vmatprep.mubr.msk.bf16.mxu0 %vm93_vm1, %v862_v18  ;;  %1867 = vmatprep.subr.bf16.mxu1 %v2108_v0 }
0x10a4   :  { %v858_v20 = vld [vmem:[#allocation2 + $0x18] sm:$0xff] }
0x10a5   :  { %v863_v21 = vpack.c.bf16 %v858_v20, %v857_v19 }
0x10a7   :  { %1836 = vmatmul.mubr.msk.bf16.vlgmr.msra.gmra.mrb[20].mxu0 %vm93_vm1, %v863_v21 }
0x10a8   :  { %1860 = vmatpush3.bf16.msra.mxu0 %v2412_v49 }
0x10a9   :  { %1861 = vmatprep.subr.bf16.mxu0 %v2108_v0 }
0x10ac   :  { %1862 = vmatpush3.bf16.msra.mxu0 %v2419_v13 }
0x10ad   :  { %1875 = vmatprep.subr.bf16.mxu0 %v2108_v0 }
0x1168   :  { %v815_v6 = vpop.f32.mrb[16].mxu1 }
0x1169   :  { %v1829_v22 = vpop.f32.mrb[17].mxu1  ;;  %v816_v50 = vadd.f32 %v2296_v28, %v815_v6 }
0x116a   :  { %v818_v23 = vpop.f32.mrb[18].mxu1 }
0x116b   :  { %v1830_v25 = vpop.f32.mrb[19].mxu1  ;;  %v823_v53 = vadd.f32 %v822_v52, %v816_v50 }
0x116d   :  { %v1652_v54 = vmul.f32 -1.442695, %v823_v53 }
0x1170   :  { %v1037_v26 = vpop.f32.mrb[20].mxu1 }
0x1171   :  { %v1038_v27 = vadd.f32 %v2445_v9, %v1037_v26  ;;  %v1849_v29 = vpop.f32.mrb[21].mxu1 }
0x1172   :  { %v1040_v30 = vpop.f32.mrb[22].mxu1 }
0x1173   :  { %1052 = vrot.lane.b32.xlu1 %v1038_v27, %s2105_s21  ;;  %v1850_v10 = vpop.f32.mrb[23].mxu1 }
0x117a   :  { %v1837_v32 = vpop.f32.mrb[20].mxu0 }
0x117b   :  { %v945_v33 = vadd.f32 %v1837_v32, %v2452_v31  ;;  %v936_v34 = vpop.f32.mrb[21].mxu0 }
0x117c   :  { %v937_v35 = vadd.f32 %v2452_v31, %v936_v34  ;;  %v1838_v36 = vpop.f32.mrb[22].mxu0 }
0x117d   :  { %968 = vst.msk [vmem:[#allocation3 + $0x10] sm:$0xff] %vm261_vm2, %v945_v33  ;;  %v948_v37 = vadd.f32 %v1838_v36, %v2452_v31  ;;  %v939_v38 = vpop.f32.mrb[23].mxu0 }
0x117e   :  { %966 = vst.msk [vmem:[#allocation3] sm:$0xff] %vm261_vm2, %v937_v35  ;;  %v940_v39 = vadd.f32 %v2452_v31, %v939_v38 }
0x117f   :  { %969 = vst.msk [vmem:[#allocation3 + $0x18] sm:$0xff] %vm261_vm2, %v948_v37 }
0x1180   :  { %967 = vst.msk [vmem:[#allocation3 + $0x8] sm:$0xff] %vm261_vm2, %v940_v39 }
0x1185   :  { %v1043_v41 = vld [vmem:[#allocation3] sm:$0xff] }
0x1186   :  { %v1044_v42 = vadd.f32 %v1043_v41, %v1038_v27 }
0x1187   :  { %v1126_v25 = vld [vmem:[#allocation3 + $0x8] sm:$0xff] }
0x1188   :  { %v1671_v43 = vmul.f32 -1.442695, %v1044_v42 }
0x118a   :  { %1961 = vpow2.f32 %v1671_v43 }
0x1194   :  { %v1962_v44 = vpop.eup %1961 }
0x1195   :  { %v1048_v45 = vadd.f32 1.0, %v1962_v44 }
0x1197   :  { %1963 = vrcp.f32 %v1048_v45 }
0x1198   :  { %1965 = vpow2.f32 %v1652_v54 }
0x11a1   :  { %v1964_v46 = vpop.eup %1963 }
0x11a2   :  { %v1966_v55 = vpop.eup %1965  ;;  %v1062_v1 = vsub.f32 1.0, %v1964_v46 }
0x11a3   :  { %v827_v56 = vadd.f32 1.0, %v1966_v55 }
0x11a5   :  { %1967 = vrcp.f32 %v827_v56 }
0x11af   :  { %v1968_v61 = vpop.eup %1967 }
0x11b0   :  { %v841_v24 = vsub.f32 1.0, %v1968_v61  ;;  %v847_v16 = vmul.f32 %v1968_v61, %v2397_v7 }
0x11e5   :  { %v1053_v47 = vpop.permute.xlu1 %1052 }
0x11e6   :  { %v1055_v48 = vmul.f32 %v1964_v46, %v1053_v47 }
0x11e8   :  { %1057 = vrot.lane.b32.xlu0 %v1055_v48, %s2105_s21 }
0x11ec   :  { %1069 = vrot.lane.b32.xlu0 %v2224_v5, %s2111_s24 }
0x11f0   :  { %831 = vrot.lane.b32.xlu0 %v816_v50, %s2105_s21 }
0x125a   :  { %v1058_v57 = vpop.permute.xlu0 %1057 }
0x125b   :  { %v1060_v59 = vadd.f32 %v1058_v57, %v1043_v41 }
0x125d   :  { %1969 = vtanh.f32 %v1060_v59 }
0x125e   :  { %v1070_v60 = vpop.permute.xlu0 %1069 }
0x125f   :  { %v1072_v3 = vmul.f32 %v1964_v46, %v1070_v60 }
0x1262   :  { %v832_v62 = vpop.permute.xlu0 %831 }
0x1263   :  { %v834_v5 = vmul.f32 %v1968_v61, %v832_v62 }
0x1265   :  { %836 = vrot.lane.b32.xlu0 %v834_v5, %s2105_s21 }
0x1267   :  { %v1970_v28 = vpop.eup %1969 }
0x1268   :  { %1064 = vrot.lane.b32.xlu1 %v1970_v28, %s2110_s23  ;;  %v1205_v28 = vld [vmem:[#allocation3 + $0x10] sm:$0xff] }
0x12d7   :  { %v837_v63 = vpop.permute.xlu0 %836 }
0x12d8   :  { %v839_v15 = vadd.f32 %v837_v63, %v822_v52 }
0x12da   :  { %1971 = vtanh.f32 %v839_v15  ;;  %v1065_v2 = vpop.permute.xlu1 %1064 }
0x12db   :  { %v1067_v4 = vmul.f32 %v1065_v2, %v1062_v1 }
0x12dd   :  { %v2470_v8 = vadd.f32 %v1072_v3, %v1067_v4 }
0x12df   :  { %v1079_v11 = vpack.c.bf16 %v2470_v8, %v2470_v8 }
0x12e1   :  { %1081 = vrot.lane.b32.xlu1 %v1079_v11, %s2110_s23 }
0x12e4   :  { %v1972_v58 = vpop.eup %1971 }
0x12e5   :  { %843 = vrot.lane.b32.xlu0 %v1972_v58, %s2110_s23 }
0x12e9   :  { %690 = vrot.lane.b32.xlu0 %v2381_v40, %s2110_s23 }
0x1353   :  { %v1082_v12 = vpop.permute.xlu1 %1081 }
0x1354   :  { %1856 = vmatmul.mubr.msk.bf16.vlgmr.msra.gmra.mrb[24].mxu1 %vm93_vm1, %v1082_v12 }
0x1355   :  { %1868 = vmatpush3.bf16.msra.mxu1 %v2412_v49  ;;  %1871 = vmatprep.mubr.msk.bf16.mxu1 %vm2109_vm0, %v2108_v0 }
0x1356   :  { %1869 = vmatprep.subr.bf16.mxu1 %v2108_v0 }
0x1357   :  { %v844_v14 = vpop.permute.xlu0 %843 }
0x1358   :  { %v846_v17 = vmul.f32 %v844_v14, %v841_v24 }
0x1359   :  { %1870 = vmatpush3.bf16.msra.mxu1 %v2419_v13 }
0x135a   :  { %v848_v18 = vadd.f32 %v847_v16, %v846_v17  ;;  %1883 = vmatprep.subr.bf16.mxu1 %v2108_v0 }
0x135b   :  { %v691_v40 = vpop.permute.xlu0 %690 }
0x135c   :  { %693 = vst.msk [vmem:[#allocation2 + $0x20] sm:$0xff] %vm93_vm1, %v691_v40  ;;  %850 = vrot.lane.b32.xlu0 %v848_v18, %s2110_s23 }
0x1363   :  { %v859_v46 = vld [vmem:[#allocation2 + $0x20] sm:$0xff] }
0x13ce   :  { %v851_v19 = vpop.permute.xlu0 %850 }
0x13cf   :  { %853 = vst.msk [vmem:[#allocation2 + $0x30] sm:$0xff] %vm93_vm1, %v851_v19  ;;  %854 = vst.msk [vmem:[#allocation10] sm:$0xff] %vm93_vm1, %v851_v19 }
0x13d6   :  { %v861_v45 = vld [vmem:[#allocation2 + $0x30] sm:$0xff] }
0x1427   :  { %v1120_v20 = vpop.f32.mrb[24].mxu1 }
0x1428   :  { %v1121_v21 = vadd.f32 %v2445_v9, %v1120_v20  ;;  %v1857_v6 = vpop.f32.mrb[25].mxu1 }
0x1429   :  { %v1123_v22 = vpop.f32.mrb[26].mxu1 }
0x142a   :  { %1135 = vrot.lane.b32.xlu1 %v1121_v21, %s2105_s21  ;;  %v1858_v23 = vpop.f32.mrb[27].mxu1  ;;  %v1127_v26 = vadd.f32 %v1126_v25, %v1121_v21 }
0x142c   :  { %v1673_v27 = vmul.f32 -1.442695, %v1127_v26 }
0x142e   :  { %1973 = vpow2.f32 %v1673_v27 }
0x1438   :  { %v1974_v29 = vpop.eup %1973 }
0x1439   :  { %v1131_v30 = vadd.f32 1.0, %v1974_v29 }
0x143b   :  { %1975 = vrcp.f32 %v1131_v30 }
0x1445   :  { %v1976_v10 = vpop.eup %1975 }
0x1446   :  { %v1145_v37 = vsub.f32 1.0, %v1976_v10  ;;  %v1151_v39 = vmul.f32 %v1976_v10, %v2470_v8 }
0x149c   :  { %v1136_v32 = vpop.permute.xlu1 %1135 }
0x149d   :  { %v1138_v33 = vmul.f32 %v1976_v10, %v1136_v32 }
0x149f   :  { %1140 = vrot.lane.b32.xlu1 %v1138_v33, %s2105_s21 }
0x1511   :  { %v1141_v34 = vpop.permute.xlu1 %1140 }
0x1512   :  { %v1143_v35 = vadd.f32 %v1141_v34, %v1126_v25  ;;  %v1284_v25 = vld [vmem:[#allocation3 + $0x18] sm:$0xff] }
0x1514   :  { %1977 = vtanh.f32 %v1143_v35 }
0x151e   :  { %v1978_v36 = vpop.eup %1977 }
0x151f   :  { %1147 = vrot.lane.b32.xlu1 %v1978_v36, %s2110_s23 }
0x1523   :  { %770 = vrot.lane.b32.xlu1 %v2397_v7, %s2110_s23  ;;  %v865_v7 = vpack.c.bf16 %v861_v45, %v861_v45 }
0x1591   :  { %v1148_v38 = vpop.permute.xlu1 %1147 }
0x1592   :  { %v1150_v41 = vmul.f32 %v1148_v38, %v1145_v37 }
0x1594   :  { %v2497_v42 = vadd.f32 %v1151_v39, %v1150_v41 }
0x1595   :  { %v771_v43 = vpop.permute.xlu1 %770 }
0x1596   :  { %773 = vst.msk [vmem:[#allocation2 + $0x28] sm:$0xff] %vm93_vm1, %v771_v43  ;;  %v1158_v44 = vpack.c.bf16 %v2497_v42, %v2497_v42 }
0x1598   :  { %1160 = vrot.lane.b32.xlu1 %v1158_v44, %s2110_s23 }
0x159d   :  { %v860_v47 = vld [vmem:[#allocation2 + $0x28] sm:$0xff] }
0x159e   :  { %v864_v48 = vpack.c.bf16 %v860_v47, %v859_v46 }
0x15a0   :  { %1839 = vmatprep.mubr.msk.bf16.mxu0 %vm93_vm1, %v864_v48 }
0x15a1   :  { %1840 = vmatmul.mubr.msk.bf16.gmra.mrb[24].mxu0 %vm93_vm1, %v865_v7 }
0x15a2   :  { %1863 = vmatprep.mubr.msk.bf16.mxu0 %vm2109_vm0, %v2108_v0 }
0x160a   :  { %v1161_v50 = vpop.permute.xlu1 %1160 }
0x160b   :  { %1864 = vmatmul.mubr.msk.bf16.vlgmr.msra.gmra.mrb[28].mxu0 %vm93_vm1, %v1161_v50 }
0x160c   :  { %1876 = vmatpush3.bf16.msra.mxu0 %v2412_v49  ;;  %1879 = vmatprep.mubr.msk.bf16.mxu0 %vm2109_vm0, %v2108_v0 }
0x160d   :  { %1877 = vmatprep.subr.bf16.mxu0 %v2108_v0 }
0x1610   :  { %1878 = vmatpush3.bf16.msra.mxu0 %v2419_v13 }
0x1611   :  { %1891 = vmatprep.subr.bf16.mxu0 %v2108_v0 }
0x1674   :  { %v1841_v51 = vpop.f32.mrb[24].mxu0 }
0x1675   :  { %v961_v52 = vadd.f32 %v1841_v51, %v2452_v31  ;;  %v952_v53 = vpop.f32.mrb[25].mxu0 }
0x1676   :  { %v953_v54 = vadd.f32 %v2452_v31, %v952_v53  ;;  %v1842_v55 = vpop.f32.mrb[26].mxu0 }
0x1677   :  { %972 = vst.msk [vmem:[#allocation3 + $0x30] sm:$0xff] %vm261_vm2, %v961_v52  ;;  %v955_v56 = vpop.f32.mrb[27].mxu0 }
0x1678   :  { %970 = vst.msk [vmem:[#allocation3 + $0x20] sm:$0xff] %vm261_vm2, %v953_v54  ;;  %v956_v57 = vadd.f32 %v2452_v31, %v955_v56 }
0x167a   :  { %971 = vst.msk [vmem:[#allocation3 + $0x28] sm:$0xff] %vm261_vm2, %v956_v57 }
0x167f   :  { %v1363_v51 = vld [vmem:[#allocation3 + $0x20] sm:$0xff] }
0x16de   :  { %v1199_v59 = vpop.f32.mrb[28].mxu0 }
0x16df   :  { %v1200_v60 = vadd.f32 %v2445_v9, %v1199_v59  ;;  %v1865_v61 = vpop.f32.mrb[29].mxu0 }
0x16e0   :  { %v1202_v62 = vpop.f32.mrb[30].mxu0 }
0x16e1   :  { %1214 = vrot.lane.b32.xlu0 %v1200_v60, %s2105_s21  ;;  %v1866_v5 = vpop.f32.mrb[31].mxu0  ;;  %v1206_v63 = vadd.f32 %v1205_v28, %v1200_v60 }
0x16e3   :  { %v1675_v15 = vmul.f32 -1.442695, %v1206_v63 }
0x16e5   :  { %1979 = vpow2.f32 %v1675_v15 }
0x16ef   :  { %v1980_v1 = vpop.eup %1979 }
0x16f0   :  { %v1210_v2 = vadd.f32 1.0, %v1980_v1 }
0x16f2   :  { %1981 = vrcp.f32 %v1210_v2 }
0x16fc   :  { %v1982_v3 = vpop.eup %1981 }
0x16fd   :  { %v1224_v24 = vsub.f32 1.0, %v1982_v3  ;;  %v1230_v16 = vmul.f32 %v1982_v3, %v2497_v42 }
0x1753   :  { %v1215_v4 = vpop.permute.xlu0 %1214 }
0x1754   :  { %v1217_v31 = vmul.f32 %v1982_v3, %v1215_v4 }
0x1756   :  { %1219 = vrot.lane.b32.xlu1 %v1217_v31, %s2105_s21 }
0x17c8   :  { %v1220_v11 = vpop.permute.xlu1 %1219 }
0x17c9   :  { %v1222_v58 = vadd.f32 %v1220_v11, %v1205_v28  ;;  %v1442_v11 = vld [vmem:[#allocation3 + $0x28] sm:$0xff] }
0x17cb   :  { %1983 = vtanh.f32 %v1222_v58 }
0x17d5   :  { %v1984_v12 = vpop.eup %1983 }
0x17d6   :  { %1226 = vrot.lane.b32.xlu0 %v1984_v12, %s2110_s23 }
0x1848   :  { %v1227_v14 = vpop.permute.xlu0 %1226 }
0x1849   :  { %v1229_v17 = vmul.f32 %v1227_v14, %v1224_v24 }
0x184b   :  { %v2525_v18 = vadd.f32 %v1230_v16, %v1229_v17 }
0x184d   :  { %v1237_v40 = vpack.c.bf16 %v2525_v18, %v2525_v18 }
0x184f   :  { %1239 = vrot.lane.b32.xlu1 %v1237_v40, %s2110_s23 }
0x18c1   :  { %v1240_v19 = vpop.permute.xlu1 %1239 }
0x18c2   :  { %1872 = vmatmul.mubr.msk.bf16.vlgmr.msra.gmra.mrb[28].mxu1 %vm93_vm1, %v1240_v19 }
0x18c3   :  { %1884 = vmatpush3.bf16.msra.mxu1 %v2412_v49  ;;  %1887 = vmatprep.mubr.msk.bf16.mxu1 %vm2109_vm0, %v2108_v0 }
0x18c4   :  { %1885 = vmatprep.subr.bf16.mxu1 %v2108_v0 }
0x18c7   :  { %1886 = vmatpush3.bf16.msra.mxu1 %v2419_v13 }
0x1995   :  { %v1278_v20 = vpop.f32.mrb[28].mxu1 }
0x1996   :  { %v1279_v21 = vadd.f32 %v2445_v9, %v1278_v20  ;;  %v1873_v6 = vpop.f32.mrb[29].mxu1 }
0x1997   :  { %v1281_v22 = vpop.f32.mrb[30].mxu1 }
0x1998   :  { %1293 = vrot.lane.b32.xlu0 %v1279_v21, %s2105_s21  ;;  %v1874_v23 = vpop.f32.mrb[31].mxu1  ;;  %v1285_v26 = vadd.f32 %v1284_v25, %v1279_v21 }
0x199a   :  { %v1677_v27 = vmul.f32 -1.442695, %v1285_v26 }
0x199c   :  { %1985 = vpow2.f32 %v1677_v27 }
0x19a6   :  { %v1986_v29 = vpop.eup %1985 }
0x19a7   :  { %v1289_v30 = vadd.f32 1.0, %v1986_v29 }
0x19a9   :  { %1987 = vrcp.f32 %v1289_v30 }
0x19b3   :  { %v1988_v10 = vpop.eup %1987 }
0x19b4   :  { %v1303_v37 = vsub.f32 1.0, %v1988_v10  ;;  %v1309_v39 = vmul.f32 %v1988_v10, %v2525_v18 }
0x1a0a   :  { %v1294_v32 = vpop.permute.xlu0 %1293 }
0x1a0b   :  { %v1296_v33 = vmul.f32 %v1988_v10, %v1294_v32 }
0x1a0d   :  { %1298 = vrot.lane.b32.xlu1 %v1296_v33, %s2105_s21 }
0x1a7f   :  { %v1299_v34 = vpop.permute.xlu1 %1298 }
0x1a80   :  { %v1301_v35 = vadd.f32 %v1299_v34, %v1284_v25 }
0x1a82   :  { %1989 = vtanh.f32 %v1301_v35  ;;  %v1521_v35 = vld [vmem:[#allocation3 + $0x30] sm:$0xff] }
0x1a8c   :  { %v1990_v36 = vpop.eup %1989 }
0x1a8d   :  { %1305 = vrot.lane.b32.xlu0 %v1990_v36, %s2110_s23 }
0x1aff   :  { %v1306_v38 = vpop.permute.xlu0 %1305 }
0x1b00   :  { %v1308_v41 = vmul.f32 %v1306_v38, %v1303_v37 }
0x1b02   :  { %v2541_v43 = vadd.f32 %v1309_v39, %v1308_v41 }
0x1b04   :  { %v1316_v44 = vpack.c.bf16 %v2541_v43, %v2541_v43 }
0x1b06   :  { %1318 = vrot.lane.b32.xlu1 %v1316_v44, %s2110_s23 }
0x1b78   :  { %v1319_v45 = vpop.permute.xlu1 %1318 }
0x1b79   :  { %1880 = vmatmul.mubr.msk.bf16.vlgmr.msra.gmra.mrb[32].mxu0 %vm93_vm1, %v1319_v45 }
0x1b7a   :  { %1892 = vmatpush3.bf16.msra.mxu0 %v2412_v49  ;;  %1895 = vmatprep.mubr.msk.bf16.mxu0 %vm2109_vm0, %v2108_v0 }
0x1b7b   :  { %1893 = vmatprep.subr.bf16.mxu0 %v2108_v0 }
0x1b7e   :  { %1894 = vmatpush3.bf16.msra.mxu0 %v2419_v13 }
0x1c4c   :  { %v1357_v46 = vpop.f32.mrb[32].mxu0 }
0x1c4d   :  { %v1358_v47 = vadd.f32 %v2445_v9, %v1357_v46  ;;  %v1881_v48 = vpop.f32.mrb[33].mxu0 }
0x1c4e   :  { %v1360_v7 = vpop.f32.mrb[34].mxu0 }
0x1c4f   :  { %1372 = vrot.lane.b32.xlu0 %v1358_v47, %s2105_s21  ;;  %v1882_v50 = vpop.f32.mrb[35].mxu0  ;;  %v1364_v52 = vadd.f32 %v1363_v51, %v1358_v47 }
0x1c51   :  { %v1679_v53 = vmul.f32 -1.442695, %v1364_v52 }
0x1c53   :  { %1991 = vpow2.f32 %v1679_v53 }
0x1c5d   :  { %v1992_v49 = vpop.eup %1991 }
0x1c5e   :  { %v1368_v54 = vadd.f32 1.0, %v1992_v49 }
0x1c60   :  { %1993 = vrcp.f32 %v1368_v54 }
0x1c6a   :  { %v1994_v55 = vpop.eup %1993 }
0x1c6b   :  { %v1382_v60 = vsub.f32 1.0, %v1994_v55  ;;  %v1388_v62 = vmul.f32 %v1994_v55, %v2541_v43 }
0x1cc1   :  { %v1373_v56 = vpop.permute.xlu0 %1372 }
0x1cc2   :  { %v1375_v0 = vmul.f32 %v1994_v55, %v1373_v56 }
0x1cc4   :  { %1377 = vrot.lane.b32.xlu1 %v1375_v0, %s2105_s21 }
0x1d36   :  { %v1378_v13 = vpop.permute.xlu1 %1377 }
0x1d37   :  { %v1380_v57 = vadd.f32 %v1378_v13, %v1363_v51 }
0x1d39   :  { %1995 = vtanh.f32 %v1380_v57 }
0x1d43   :  { %v1996_v59 = vpop.eup %1995 }
0x1d44   :  { %1384 = vrot.lane.b32.xlu0 %v1996_v59, %s2110_s23 }
0x1db6   :  { %v1385_v61 = vpop.permute.xlu0 %1384 }
0x1db7   :  { %v1387_v5 = vmul.f32 %v1385_v61, %v1382_v60 }
0x1db9   :  { %v1389_v28 = vadd.f32 %v1388_v62, %v1387_v5 }
0x1dbb   :  { %v1395_v63 = vpack.c.bf16 %v1389_v28, %v1389_v28 }
0x1dbd   :  { %1397 = vrot.lane.b32.xlu1 %v1395_v63, %s2110_s23 }
0x1e2f   :  { %v1398_v15 = vpop.permute.xlu1 %1397 }
0x1e30   :  { %1888 = vmatmul.mubr.msk.bf16.vlgmr.msra.gmra.mrb[32].mxu1 %vm93_vm1, %v1398_v15 }
0x1f03   :  { %v1436_v1 = vpop.f32.mrb[32].mxu1 }
0x1f04   :  { %v1437_v2 = vadd.f32 %v2445_v9, %v1436_v1  ;;  %v1889_v3 = vpop.f32.mrb[33].mxu1 }
0x1f05   :  { %v1439_v4 = vpop.f32.mrb[34].mxu1 }
0x1f06   :  { %1451 = vrot.lane.b32.xlu0 %v1437_v2, %s2105_s21  ;;  %v1890_v31 = vpop.f32.mrb[35].mxu1  ;;  %v1443_v58 = vadd.f32 %v1442_v11, %v1437_v2 }
0x1f08   :  { %v1681_v12 = vmul.f32 -1.442695, %v1443_v58 }
0x1f0a   :  { %1997 = vpow2.f32 %v1681_v12 }
0x1f14   :  { %v1998_v24 = vpop.eup %1997 }
0x1f15   :  { %v1447_v14 = vadd.f32 1.0, %v1998_v24 }
0x1f17   :  { %1999 = vrcp.f32 %v1447_v14 }
0x1f21   :  { %v2000_v16 = vpop.eup %1999 }
0x1f22   :  { %v1461_v6 = vsub.f32 1.0, %v2000_v16  ;;  %v1467_v23 = vmul.f32 %v2000_v16, %v1389_v28 }
0x1f78   :  { %v1452_v17 = vpop.permute.xlu0 %1451 }
0x1f79   :  { %v1454_v40 = vmul.f32 %v2000_v16, %v1452_v17 }
0x1f7b   :  { %1456 = vrot.lane.b32.xlu1 %v1454_v40, %s2105_s21 }
0x1fed   :  { %v1457_v19 = vpop.permute.xlu1 %1456 }
0x1fee   :  { %v1459_v20 = vadd.f32 %v1457_v19, %v1442_v11 }
0x1ff0   :  { %2001 = vtanh.f32 %v1459_v20 }
0x1ffa   :  { %v2002_v21 = vpop.eup %2001 }
0x1ffb   :  { %1463 = vrot.lane.b32.xlu0 %v2002_v21, %s2110_s23 }
0x206d   :  { %v1464_v22 = vpop.permute.xlu0 %1463 }
0x206e   :  { %v1466_v25 = vmul.f32 %v1464_v22, %v1461_v6 }
0x2070   :  { %v1468_v26 = vadd.f32 %v1467_v23, %v1466_v25 }
0x2072   :  { %v1474_v27 = vpack.c.bf16 %v1468_v26, %v1468_v26 }
0x2074   :  { %1476 = vrot.lane.b32.xlu1 %v1474_v27, %s2110_s23 }
0x20e6   :  { %v1477_v29 = vpop.permute.xlu1 %1476 }
0x20e7   :  { %1896 = vmatmul.mubr.msk.bf16.vlgmr.msra.gmra.mrb[36].mxu0 %vm93_vm1, %v1477_v29 }
0x21ba   :  { %v1515_v30 = vpop.f32.mrb[36].mxu0 }
0x21bb   :  { %v1516_v10 = vadd.f32 %v2445_v9, %v1515_v30  ;;  %v1897_v32 = vpop.f32.mrb[37].mxu0 }
0x21bc   :  { %v1518_v33 = vpop.f32.mrb[38].mxu0 }
0x21bd   :  { %1530 = vrot.lane.b32.xlu0 %v1516_v10, %s2105_s21  ;;  %v1898_v34 = vpop.f32.mrb[39].mxu0  ;;  %v1522_v36 = vadd.f32 %v1521_v35, %v1516_v10 }
0x21bf   :  { %v1683_v37 = vmul.f32 -1.442695, %v1522_v36 }
0x21c1   :  { %2003 = vpow2.f32 %v1683_v37 }
0x21cb   :  { %v2004_v38 = vpop.eup %2003 }
0x21cc   :  { %v1526_v39 = vadd.f32 1.0, %v2004_v38 }
0x21ce   :  { %2005 = vrcp.f32 %v1526_v39 }
0x21d8   :  { %v2006_v41 = vpop.eup %2005 }
0x21d9   :  { %v1540_v54 = vsub.f32 1.0, %v2006_v41 }
0x222f   :  { %v1531_v44 = vpop.permute.xlu0 %1530 }
0x2230   :  { %v1533_v45 = vmul.f32 %v2006_v41, %v1531_v44 }
0x2232   :  { %1535 = vrot.lane.b32.xlu1 %v1533_v45, %s2105_s21 }
0x2236   :  { %1075 = vrot.lane.b32.xlu1 %v2470_v8, %s2110_s23 }
0x223a   :  { %1233 = vrot.lane.b32.xlu1 %v2525_v18, %s2110_s23 }
0x223e   :  { %1391 = vrot.lane.b32.xlu1 %v1389_v28, %s2110_s23 }
0x22a4   :  { %v1536_v9 = vpop.permute.xlu1 %1535 }
0x22a5   :  { %v1538_v46 = vadd.f32 %v1536_v9, %v1521_v35 }
0x22a7   :  { %2007 = vtanh.f32 %v1538_v46 }
0x22a8   :  { %v1076_v47 = vpop.permute.xlu1 %1075 }
0x22a9   :  { %1078 = vst.msk [vmem:[#allocation2] sm:$0xff] %vm93_vm1, %v1076_v47 }
0x22ac   :  { %v1234_v48 = vpop.permute.xlu1 %1233 }
0x22ad   :  { %1236 = vst.msk [vmem:[#allocation2 + $0x10] sm:$0xff] %vm93_vm1, %v1234_v48 }
0x22b0   :  { %v1555_v7 = vld [vmem:[#allocation2] sm:$0xff]  ;;  %v1392_v50 = vpop.permute.xlu1 %1391 }
0x22b1   :  { %v2008_v51 = vpop.eup %2007  ;;  %v1691_v52 = vpack.c.bf16 %v1555_v7, %v1555_v7  ;;  %1394 = vst.msk [vmem:[#allocation2 + $0x20] sm:$0xff] %vm93_vm1, %v1392_v50 }
0x22b2   :  { %1542 = vrot.lane.b32.xlu0 %v2008_v51, %s2110_s23 }
0x22b3   :  { %1592 = vst.msk [vmem:[%s2636_s8] sm:$0xf] %vm1591_vm3, %v1691_v52 }
0x22b4   :  { %v1557_v8 = vld [vmem:[#allocation2 + $0x10] sm:$0xff] }
0x22b5   :  { %v1693_v18 = vpack.c.bf16 %v1557_v8, %v1557_v8 }
0x22b6   :  { %1154 = vrot.lane.b32.xlu0 %v2497_v42, %s2110_s23  ;;  %v1546_v42 = vmul.f32 %v2006_v41, %v1468_v26 }
0x22b7   :  { %1594 = vst.msk [vmem:[%s2636_s8 + $0x8] sm:$0xf] %vm1591_vm3, %v1693_v18 }
0x22b8   :  { %v1559_v53 = vld [vmem:[#allocation2 + $0x20] sm:$0xff] }
0x22b9   :  { %v1695_v49 = vpack.c.bf16 %v1559_v53, %v1559_v53 }
0x22ba   :  { %1312 = vrot.lane.b32.xlu0 %v2541_v43, %s2110_s23 }
0x22bb   :  { %1596 = vst.msk [vmem:[%s2636_s8 + $0x10] sm:$0xf] %vm1591_vm3, %v1695_v49 }
0x22be   :  { %1470 = vrot.lane.b32.xlu0 %v1468_v26, %s2110_s23 }
0x2324   :  { %v1543_v55 = vpop.permute.xlu0 %1542 }
0x2325   :  { %v1545_v56 = vmul.f32 %v1543_v55, %v1540_v54 }
0x2327   :  { %v1547_v0 = vadd.f32 %v1546_v42, %v1545_v56 }
0x2328   :  { %v1155_v13 = vpop.permute.xlu0 %1154 }
0x2329   :  { %1157 = vst.msk [vmem:[#allocation2 + $0x8] sm:$0xff] %vm93_vm1, %v1155_v13  ;;  %1549 = vrot.lane.b32.xlu1 %v1547_v0, %s2110_s23 }
0x232c   :  { %v1313_v57 = vpop.permute.xlu0 %1312 }
0x232d   :  { %1315 = vst.msk [vmem:[#allocation2 + $0x18] sm:$0xff] %vm93_vm1, %v1313_v57 }
0x2330   :  { %v1556_v43 = vld [vmem:[#allocation2 + $0x8] sm:$0xff]  ;;  %v1471_v59 = vpop.permute.xlu0 %1470 }
0x2331   :  { %v1692_v60 = vpack.c.bf16 %v1556_v43, %v1556_v43  ;;  %1473 = vst.msk [vmem:[#allocation2 + $0x28] sm:$0xff] %vm93_vm1, %v1471_v59 }
0x2333   :  { %1593 = vst.msk [vmem:[%s2636_s8 + $0x4] sm:$0xf] %vm1591_vm3, %v1692_v60 }
0x2334   :  { %v1558_v61 = vld [vmem:[#allocation2 + $0x18] sm:$0xff] }
0x2335   :  { %v1694_v62 = vpack.c.bf16 %v1558_v61, %v1558_v61 }
0x2337   :  { %1595 = vst.msk [vmem:[%s2636_s8 + $0xc] sm:$0xf] %vm1591_vm3, %v1694_v62 }
0x2338   :  { %v1560_v5 = vld [vmem:[#allocation2 + $0x28] sm:$0xff] }
0x2339   :  { %v1696_v28 = vpack.c.bf16 %v1560_v5, %v1560_v5 }
0x233b   :  { %1597 = vst.msk [vmem:[%s2636_s8 + $0x14] sm:$0xf] %vm1591_vm3, %v1696_v28 }
0x239b   :  { %v1550_v63 = vpop.permute.xlu1 %1549 }
0x239c   :  { %1552 = vst.msk [vmem:[#allocation2 + $0x30] sm:$0xff] %vm93_vm1, %v1550_v63  ;;  %1554 = vst.msk [vmem:[#allocation10 + $0x8] sm:$0xff] %vm93_vm1, %v1550_v63 }
0x239d   :  { %2086 = shalt.err (!%p2083_p0)
}
0x239e   :  { %s2087_s19 = scalar_lea.hbm %s2637_s9, 256 }
0x239f   :  { %p2088_p1 = scmp.ne.s32.totalorder %s2637_s9, %s2087_s19  ;;  %p2091_p2 = scmp.lt.u32.totalorder %s2087_s19, %s2637_s9 }
0x23a1   :  { %p2093_p3 = pnand %p2091_p2, %p2088_p1 }
0x23a3   :  { %2096 = shalt.err (!%p2093_p3)
}
0x23a4   :  { %s2113_s2 = smov 128   ;;  %s2114_s12 = smov 8   ;;  %v1561_v15 = vld [vmem:[#allocation2 + $0x30] sm:$0xff] }
0x23a5   :  { %1612 = dma.vmem_to_hbm [thread:$0]  %s1607_s17, 256, %s2637_s9, [#allocation6], %s2113_s2, %s2113_s2, %s2114_s12   ;;  %v1697_v1 = vpack.c.bf16 %v1561_v15, %v1561_v15 }
0x23a7   :  { %1598 = vst.msk [vmem:[%s2636_s8 + $0x18] sm:$0xf] %vm1591_vm3, %v1697_v1 }
0x23a8   :  { %2101 = dma.done.wait [#allocation6], 256  }
0x23a9   :  { %2102 = vsyncadd [#allocation6], 4294967040 }
0x23aa   :  { %1618 = vsyncpa [#allocation5], 1 }
0x23ab   :  { %1619 = vsyncpa [#allocation8], 1 }
0x23ac   :  { %1620 = vsyncpa [#allocation6], 1 }

</bundles_post_ra>
